<compile_context>
chip_gen: v7x
topology: tpu7x:2x2x1
jax: 0.10.0
libtpu: 0.0.40
codegen_flags: <defaults>
</compile_context>

<pallas_src>
import functools

import jax
import jax.numpy as jnp
from jax.experimental import pallas as pl
from jax.experimental.pallas import tpu as pltpu


# ----------------------------------------------------------------------------- helpers
def _mxu_dot(a, b):
    """MXU matmul with f32 accumulation; operands cast to the narrower of the pair."""
    dt = b.dtype if jnp.dtype(b.dtype).itemsize < jnp.dtype(a.dtype).itemsize else a.dtype
    return jnp.dot(a.astype(dt), b.astype(dt), preferred_element_type=jnp.float32)


def _block_diag(blocks):
    """Block-diagonal assembly of equal-shaped 2-D blocks (wrapper-side, plain XLA)."""
    k = len(blocks)
    r, c = blocks[0].shape
    rows = []
    for j, blk in enumerate(blocks):
        row = [blk if jj == j else jnp.zeros((r, c), blk.dtype) for jj in range(k)]
        rows.append(jnp.concatenate(row, axis=1))
    return jnp.concatenate(rows, axis=0)


# ----------------------------------------------------------------------------- kernel
def _decoder_tile_kernel(x_ref, rt_ref, rec_big_ref, snd_big_ref, recT_big_ref,
                         w1s_ref, w1r_ref, b1_ref, w2_ref, b2_ref,
                         wo1x_ref, wo1a_ref, bo1_ref, wo2_ref, bo2_ref,
                         wo3_ref, bo3_ref, out_ref,
                         *, n_tt, k_types, msg_out, start):
    x = x_ref[...]                    # (TT*N, D)   node features, rows ordered (t, n)
    rt = rt_ref[...]                  # (E, ET)     edge-type posterior for this sample

    # edge gather for all TT timesteps in a single matmul each (block-diag gather mats)
    senders = _mxu_dot(snd_big_ref[...], x)       # (TT*E, D)
    receivers = _mxu_dot(rec_big_ref[...], x)     # (TT*E, D)

    # msg_fc1 for all non-skipped edge types at once; concat avoided via split weights
    h = (_mxu_dot(senders, w1s_ref[...])
         + _mxu_dot(receivers, w1r_ref[...])
         + b1_ref[...])
    h = jnp.maximum(h, 0.0)                       # (TT*E, K*msg_hid)
    # F.dropout with p=0.0 is the identity
    m = _mxu_dot(h, w2_ref[...]) + b2_ref[...]    # block-diag w2: one wide matmul
    m = jnp.maximum(m, 0.0)                       # (TT*E, K*msg_out)

    # weight each edge-type block by rel_type and sum over types
    rt_rows = jnp.concatenate([rt] * n_tt, axis=0)            # (TT*E, ET) sublane tile
    all_msgs = m[:, 0:msg_out] * rt_rows[:, start:start + 1]
    for j in range(1, k_types):                                # tiny static loop over ET
        all_msgs = all_msgs + (m[:, j * msg_out:(j + 1) * msg_out]
                               * rt_rows[:, start + j:start + j + 1])

    # aggregate edges -> nodes for all TT timesteps in one matmul (pre-transposed rec^T)
    agg = _mxu_dot(recT_big_ref[...], all_msgs)   # (TT*N, msg_out)

    # output MLP; concat([x, agg]) @ wo1 replaced by split-weight partial matmuls
    o = (_mxu_dot(x, wo1x_ref[...])
         + _mxu_dot(agg, wo1a_ref[...])
         + bo1_ref[...])
    o = jnp.maximum(o, 0.0)
    o = _mxu_dot(o, wo2_ref[...]) + bo2_ref[...]
    o = jnp.maximum(o, 0.0)
    pred = _mxu_dot(o, wo3_ref[...]) + bo3_ref[...]

    out_ref[...] = (x + pred).astype(out_ref.dtype)           # residual connection


# ----------------------------------------------------------------------------- wrapper
def mlp_decoder_forward(inputs, rel_type, rel_rec, rel_send, params,
                        pred_steps=1, skip_first=True, t_tile=None,
                        mxu_dtype=jnp.float32):
    """inputs: [B, N, T, D]; rel_type: [B, E, ET]; rel_rec/rel_send: [E, N]."""
    assert pred_steps == 1  # TODO(synk): autoregressive rollout for pred_steps > 1 not implemented
    B, N, T, D = inputs.shape
    E, ET = rel_type.shape[1], rel_type.shape[2]

    TT = T if t_tile is None else t_tile          # timesteps folded into one grid step
    assert T % TT == 0
    start = 1 if skip_first else 0
    K = ET - start
    assert K >= 1

    H1 = params['w1'].shape[-1]
    H2 = params['w2'].shape[-1]

    # node features: [B, N, T, D] -> [B, T, N, D] -> (B, T//TT, TT*N, D), rows = (t, n)
    x = jnp.transpose(inputs, (0, 2, 1, 3)).astype(jnp.float32)
    x_tiles = x.reshape(B, T // TT, TT * N, D)
    rel_type = rel_type.astype(jnp.float32)       # passed as (B, E, ET) -- no T broadcast

    # block-diagonal gather / scatter matrices (built once; constant across grid steps)
    eye_tt = jnp.eye(TT, dtype=jnp.float32)
    rec_big = jnp.kron(eye_tt, rel_rec.astype(jnp.float32))     # (TT*E, TT*N)
    snd_big = jnp.kron(eye_tt, rel_send.astype(jnp.float32))    # (TT*E, TT*N)
    recT_big = rec_big.T                                        # (TT*N, TT*E)

    # fused / split weights (active edge types only)
    act = list(range(start, ET))
    W1s = jnp.concatenate([params['w1'][i][:D, :] for i in act], axis=1)   # (D, K*H1)
    W1r = jnp.concatenate([params['w1'][i][D:, :] for i in act], axis=1)   # (D, K*H1)
    B1 = jnp.concatenate([params['b1'][i] for i in act], axis=1)           # (1, K*H1)
    W2b = _block_diag([params['w2'][i] for i in act])                      # (K*H1, K*H2)
    B2 = jnp.concatenate([params['b2'][i] for i in act], axis=1)           # (1, K*H2)
    Wo1x = params['wo1'][:D, :]                                            # (D, n_hid)
    Wo1a = params['wo1'][D:, :]                                            # (H2, n_hid)

    def c(a):  # MXU-input dtype for weight-like operands (f32 default, bf16 optional)
        return a.astype(mxu_dtype)

    consts = [c(rec_big), c(snd_big), c(recT_big),
              c(W1s), c(W1r), B1.astype(jnp.float32),
              c(W2b), B2.astype(jnp.float32),
              c(Wo1x), c(Wo1a), params['bo1'].astype(jnp.float32),
              c(params['wo2']), params['bo2'].astype(jnp.float32),
              c(params['wo3']), params['bo3'].astype(jnp.float32)]

    def const_spec(arr):
        nd = arr.ndim
        # block index never changes -> Pallas only DMAs these once across the grid
        return pl.BlockSpec(arr.shape, lambda b, s, _nd=nd: (0,) * _nd)

    kernel = functools.partial(_decoder_tile_kernel,
                               n_tt=TT, k_types=K, msg_out=H2, start=start)

    grid = (B, T // TT)                           # >= 2 parallel steps (v7x megacore)
    out_tiles = pl.pallas_call(
        kernel,
        out_shape=jax.ShapeDtypeStruct((B, T // TT, TT * N, D), jnp.float32),
        grid_spec=pltpu.PrefetchScalarGridSpec(
            num_scalar_prefetch=0,
            grid=grid,
            in_specs=[
                pl.BlockSpec((None, None, TT * N, D), lambda b, s: (b, s, 0, 0)),  # x tile
                pl.BlockSpec((None, E, ET), lambda b, s: (b, 0, 0)),               # rel_type
            ] + [const_spec(a) for a in consts],
            out_specs=pl.BlockSpec((None, None, TT * N, D), lambda b, s: (b, s, 0, 0)),
        ),
        compiler_params=pltpu.CompilerParams(
            dimension_semantics=("parallel", "parallel")),
    )(x_tiles, rel_type, *consts)

    y = out_tiles.reshape(B, T, N, D)
    pred_all = y[:, :T - 1]                                      # drop last timestep
    return jnp.transpose(pred_all, (0, 2, 1, 3))                 # [B, N, T-1, D]


# ----------------------------------------------------------------------------- pure-JAX reference
def ref_forward(inputs, rel_type, rel_rec, rel_send, params, skip_first=True):
    B, N, T, D = inputs.shape
    ET = rel_type.shape[-1]
    x = jnp.transpose(inputs, (0, 2, 1, 3))
    receivers = jnp.einsum('en,btnd->bted', rel_rec, x)
    senders = jnp.einsum('en,btnd->bted', rel_send, x)
    pre_msg = jnp.concatenate([senders, receivers], -1)
    rt = jnp.broadcast_to(rel_type[:, None], (B, T) + rel_type.shape[1:])
    all_msgs = jnp.zeros(pre_msg.shape[:-1] + (params['w2'].shape[-1],), jnp.float32)
    for i in range(1 if skip_first else 0, ET):
        m = jax.nn.relu(pre_msg @ params['w1'][i] + params['b1'][i, 0])
        m = jax.nn.relu(m @ params['w2'][i] + params['b2'][i, 0])
        all_msgs = all_msgs + m * rt[..., i:i + 1]
    agg = jnp.einsum('en,btem->btnm', rel_rec, all_msgs)
    aug = jnp.concatenate([x, agg], -1)
    h = jax.nn.relu(aug @ params['wo1'] + params['bo1'][0])
    h = jax.nn.relu(h @ params['wo2'] + params['bo2'][0])
    pred = h @ params['wo3'] + params['bo3'][0]
    y = x + pred
    return jnp.transpose(y[:, :T - 1], (0, 2, 1, 3))


# ----------------------------------------------------------------------------- main
if __name__ == "__main__":
    # small deterministic config
    B, N, T, D = 2, 8, 8, 4            # batch, atoms, timesteps, n_in_node
    edge_types, msg_hid, msg_out, n_hid = 2, 32, 32, 32
    E = N * (N - 1)                    # fully connected, no self-loops

    key = jax.random.PRNGKey(0)
    ks = jax.random.split(key, 16)

    # parameters (Linear weights stored as [in, out]; biases kept 2-D for TPU layout)
    params = {
        'w1':  0.1 * jax.random.normal(ks[0], (edge_types, 2 * D, msg_hid), jnp.float32),
        'b1':  0.1 * jax.random.normal(ks[1], (edge_types, 1, msg_hid), jnp.float32),
        'w2':  0.1 * jax.random.normal(ks[2], (edge_types, msg_hid, msg_out), jnp.float32),
        'b2':  0.1 * jax.random.normal(ks[3], (edge_types, 1, msg_out), jnp.float32),
        'wo1': 0.1 * jax.random.normal(ks[4], (D + msg_out, n_hid), jnp.float32),
        'bo1': 0.1 * jax.random.normal(ks[5], (1, n_hid), jnp.float32),
        'wo2': 0.1 * jax.random.normal(ks[6], (n_hid, n_hid), jnp.float32),
        'bo2': 0.1 * jax.random.normal(ks[7], (1, n_hid), jnp.float32),
        'wo3': 0.1 * jax.random.normal(ks[8], (n_hid, D), jnp.float32),
        'bo3': 0.1 * jax.random.normal(ks[9], (1, D), jnp.float32),
    }

    # inputs / relations
    inputs = jax.random.normal(ks[10], (B, N, T, D), jnp.float32)
    logits = jax.random.normal(ks[11], (B, E, edge_types), jnp.float32)
    rel_type = jax.nn.softmax(logits, axis=-1)

    # one-hot receiver / sender matrices over all off-diagonal node pairs
    offdiag = [(r, s) for r in range(N) for s in range(N) if r != s]
    rel_rec = jnp.array([[1.0 if n == r else 0.0 for n in range(N)] for (r, s) in offdiag],
                        jnp.float32)
    rel_send = jnp.array([[1.0 if n == s else 0.0 for n in range(N)] for (r, s) in offdiag],
                         jnp.float32)

    out = mlp_decoder_forward(inputs, rel_type, rel_rec, rel_send, params,
                              pred_steps=1, skip_first=True,
                              mxu_dtype=jnp.float32)   # jnp.bfloat16 on v6e/v7x for MXU inputs
    out = jax.block_until_ready(out)

    ref = jax.block_until_ready(
        ref_forward(inputs, rel_type, rel_rec, rel_send, params, skip_first=True))

    assert out.shape == (B, N, T - 1, D), out.shape
    assert jnp.allclose(out, ref, atol=1e-4, rtol=1e-4), \
        float(jnp.max(jnp.abs(out - ref)))

    print("KERNEL_OK")
</pallas_src>

<mosaic_0001>
module attributes {stable_mosaic.version = 11 : i64} {
  func.func @_decoder_tile_kernel(%arg0: i32, %arg1: i32, %arg2: memref<1x1x64x4xf32, #tpu.memory_space<vmem>>, %arg3: memref<1x56x2xf32, #tpu.memory_space<vmem>>, %arg4: memref<448x64xf32, #tpu.memory_space<vmem>>, %arg5: memref<448x64xf32, #tpu.memory_space<vmem>>, %arg6: memref<64x448xf32, #tpu.memory_space<vmem>>, %arg7: memref<4x32xf32, #tpu.memory_space<vmem>>, %arg8: memref<4x32xf32, #tpu.memory_space<vmem>>, %arg9: memref<1x32xf32, #tpu.memory_space<vmem>>, %arg10: memref<32x32xf32, #tpu.memory_space<vmem>>, %arg11: memref<1x32xf32, #tpu.memory_space<vmem>>, %arg12: memref<4x32xf32, #tpu.memory_space<vmem>>, %arg13: memref<32x32xf32, #tpu.memory_space<vmem>>, %arg14: memref<1x32xf32, #tpu.memory_space<vmem>>, %arg15: memref<32x32xf32, #tpu.memory_space<vmem>>, %arg16: memref<1x32xf32, #tpu.memory_space<vmem>>, %arg17: memref<32x4xf32, #tpu.memory_space<vmem>>, %arg18: memref<1x4xf32, #tpu.memory_space<vmem>>, %arg19: memref<1x1x64x4xf32, #tpu.memory_space<vmem>>) attributes {dimension_semantics = [#tpu.dimension_semantics<parallel>, #tpu.dimension_semantics<parallel>], iteration_bounds = array<i64: 2, 1>, scalar_prefetch = 0 : i64, scratch_operands = 0 : i64, tpu.core_type = #tpu.core_type<tc>, window_params = [{transform_indices = @transform_0, window_bounds = array<i64: 1, 1, 64, 4>}, {transform_indices = @transform_1, window_bounds = array<i64: 1, 56, 2>}, {pipeline_mode = #tpu.pipeline_mode<synchronous>, transform_indices = @transform_2, window_bounds = array<i64: 448, 64>}, {pipeline_mode = #tpu.pipeline_mode<synchronous>, transform_indices = @transform_3, window_bounds = array<i64: 448, 64>}, {pipeline_mode = #tpu.pipeline_mode<synchronous>, transform_indices = @transform_4, window_bounds = array<i64: 64, 448>}, {pipeline_mode = #tpu.pipeline_mode<synchronous>, transform_indices = @transform_5, window_bounds = array<i64: 4, 32>}, {pipeline_mode = #tpu.pipeline_mode<synchronous>, transform_indices = @transform_6, window_bounds = array<i64: 4, 32>}, {pipeline_mode = #tpu.pipeline_mode<synchronous>, transform_indices = @transform_7, window_bounds = array<i64: 1, 32>}, {pipeline_mode = #tpu.pipeline_mode<synchronous>, transform_indices = @transform_8, window_bounds = array<i64: 32, 32>}, {pipeline_mode = #tpu.pipeline_mode<synchronous>, transform_indices = @transform_9, window_bounds = array<i64: 1, 32>}, {pipeline_mode = #tpu.pipeline_mode<synchronous>, transform_indices = @transform_10, window_bounds = array<i64: 4, 32>}, {pipeline_mode = #tpu.pipeline_mode<synchronous>, transform_indices = @transform_11, window_bounds = array<i64: 32, 32>}, {pipeline_mode = #tpu.pipeline_mode<synchronous>, transform_indices = @transform_12, window_bounds = array<i64: 1, 32>}, {pipeline_mode = #tpu.pipeline_mode<synchronous>, transform_indices = @transform_13, window_bounds = array<i64: 32, 32>}, {pipeline_mode = #tpu.pipeline_mode<synchronous>, transform_indices = @transform_14, window_bounds = array<i64: 1, 32>}, {pipeline_mode = #tpu.pipeline_mode<synchronous>, transform_indices = @transform_15, window_bounds = array<i64: 32, 4>}, {pipeline_mode = #tpu.pipeline_mode<synchronous>, transform_indices = @transform_16, window_bounds = array<i64: 1, 4>}, {transform_indices = @transform_17, window_bounds = array<i64: 1, 1, 64, 4>}]} {
    %c0 = arith.constant 0 : index
    %c0_0 = arith.constant 0 : index
    %c0_1 = arith.constant 0 : index
    %c0_2 = arith.constant 0 : index
    %0 = vector.load %arg2[%c0, %c0_0, %c0_1, %c0_2] : memref<1x1x64x4xf32, #tpu.memory_space<vmem>>, vector<1x1x64x4xf32>
    %1 = vector.shape_cast %0 : vector<1x1x64x4xf32> to vector<64x4xf32>
    %c0_3 = arith.constant 0 : index
    %c0_4 = arith.constant 0 : index
    %c0_5 = arith.constant 0 : index
    %2 = vector.load %arg3[%c0_3, %c0_4, %c0_5] : memref<1x56x2xf32, #tpu.memory_space<vmem>>, vector<1x56x2xf32>
    %3 = vector.shape_cast %2 : vector<1x56x2xf32> to vector<56x2xf32>
    %c0_6 = arith.constant 0 : index
    %c0_7 = arith.constant 0 : index
    %4 = vector.load %arg5[%c0_6, %c0_7] : memref<448x64xf32, #tpu.memory_space<vmem>>, vector<448x64xf32>
    %cst = arith.constant dense<0.000000e+00> : vector<448x4xf32>
    %5 = tpu.matmul %4, %1, %cst {dimension_numbers = #tpu.dot_dimension_numbers<[1], [0], [0], [1], [0, 0, 1, 1], [], []>} : vector<448x64xf32>, vector<64x4xf32>, vector<448x4xf32> -> vector<448x4xf32>
    %c0_8 = arith.constant 0 : index
    %c0_9 = arith.constant 0 : index
    %6 = vector.load %arg4[%c0_8, %c0_9] : memref<448x64xf32, #tpu.memory_space<vmem>>, vector<448x64xf32>
    %cst_10 = arith.constant dense<0.000000e+00> : vector<448x4xf32>
    %7 = tpu.matmul %6, %1, %cst_10 {dimension_numbers = #tpu.dot_dimension_numbers<[1], [0], [0], [1], [0, 0, 1, 1], [], []>} : vector<448x64xf32>, vector<64x4xf32>, vector<448x4xf32> -> vector<448x4xf32>
    %c0_11 = arith.constant 0 : index
    %c0_12 = arith.constant 0 : index
    %8 = vector.load %arg7[%c0_11, %c0_12] : memref<4x32xf32, #tpu.memory_space<vmem>>, vector<4x32xf32>
    %cst_13 = arith.constant dense<0.000000e+00> : vector<448x32xf32>
    %9 = tpu.matmul %5, %8, %cst_13 {dimension_numbers = #tpu.dot_dimension_numbers<[1], [0], [0], [1], [0, 0, 1, 1], [], []>} : vector<448x4xf32>, vector<4x32xf32>, vector<448x32xf32> -> vector<448x32xf32>
    %c0_14 = arith.constant 0 : index
    %c0_15 = arith.constant 0 : index
    %10 = vector.load %arg8[%c0_14, %c0_15] : memref<4x32xf32, #tpu.memory_space<vmem>>, vector<4x32xf32>
    %cst_16 = arith.constant dense<0.000000e+00> : vector<448x32xf32>
    %11 = tpu.matmul %7, %10, %cst_16 {dimension_numbers = #tpu.dot_dimension_numbers<[1], [0], [0], [1], [0, 0, 1, 1], [], []>} : vector<448x4xf32>, vector<4x32xf32>, vector<448x32xf32> -> vector<448x32xf32>
    %12 = arith.addf %9, %11 : vector<448x32xf32>
    %c0_17 = arith.constant 0 : index
    %c0_18 = arith.constant 0 : index
    %13 = vector.load %arg9[%c0_17, %c0_18] : memref<1x32xf32, #tpu.memory_space<vmem>>, vector<1x32xf32>
    %14 = vector.broadcast %13 : vector<1x32xf32> to vector<448x32xf32>
    %15 = arith.addf %12, %14 : vector<448x32xf32>
    %cst_19 = arith.constant 0.000000e+00 : f32
    %16 = vector.broadcast %cst_19 : f32 to vector<448x32xf32>
    %17 = arith.maximumf %15, %16 : vector<448x32xf32>
    %c0_20 = arith.constant 0 : index
    %c0_21 = arith.constant 0 : index
    %18 = vector.load %arg10[%c0_20, %c0_21] : memref<32x32xf32, #tpu.memory_space<vmem>>, vector<32x32xf32>
    %cst_22 = arith.constant dense<0.000000e+00> : vector<448x32xf32>
    %19 = tpu.matmul %17, %18, %cst_22 {dimension_numbers = #tpu.dot_dimension_numbers<[1], [0], [0], [1], [0, 0, 1, 1], [], []>} : vector<448x32xf32>, vector<32x32xf32>, vector<448x32xf32> -> vector<448x32xf32>
    %c0_23 = arith.constant 0 : index
    %c0_24 = arith.constant 0 : index
    %20 = vector.load %arg11[%c0_23, %c0_24] : memref<1x32xf32, #tpu.memory_space<vmem>>, vector<1x32xf32>
    %21 = vector.broadcast %20 : vector<1x32xf32> to vector<448x32xf32>
    %22 = arith.addf %19, %21 : vector<448x32xf32>
    %cst_25 = arith.constant 0.000000e+00 : f32
    %23 = vector.broadcast %cst_25 : f32 to vector<448x32xf32>
    %24 = arith.maximumf %22, %23 : vector<448x32xf32>
    %25 = tpu.concatenate %3, %3, %3, %3, %3, %3, %3, %3 in 0 : vector<56x2xf32>, vector<56x2xf32>, vector<56x2xf32>, vector<56x2xf32>, vector<56x2xf32>, vector<56x2xf32>, vector<56x2xf32>, vector<56x2xf32> -> vector<448x2xf32>
    %26 = vector.extract_strided_slice %25 {offsets = [0, 1], sizes = [448, 1], strides = [1, 1]} : vector<448x2xf32> to vector<448x1xf32>
    %27 = vector.broadcast %26 : vector<448x1xf32> to vector<448x32xf32>
    %28 = arith.mulf %24, %27 : vector<448x32xf32>
    %c0_26 = arith.constant 0 : index
    %c0_27 = arith.constant 0 : index
    %29 = vector.load %arg6[%c0_26, %c0_27] : memref<64x448xf32, #tpu.memory_space<vmem>>, vector<64x448xf32>
    %cst_28 = arith.constant dense<0.000000e+00> : vector<64x32xf32>
    %30 = tpu.matmul %29, %28, %cst_28 {dimension_numbers = #tpu.dot_dimension_numbers<[1], [0], [0], [1], [0, 0, 1, 1], [], []>} : vector<64x448xf32>, vector<448x32xf32>, vector<64x32xf32> -> vector<64x32xf32>
    %c0_29 = arith.constant 0 : index
    %c0_30 = arith.constant 0 : index
    %31 = vector.load %arg12[%c0_29, %c0_30] : memref<4x32xf32, #tpu.memory_space<vmem>>, vector<4x32xf32>
    %cst_31 = arith.constant dense<0.000000e+00> : vector<64x32xf32>
    %32 = tpu.matmul %1, %31, %cst_31 {dimension_numbers = #tpu.dot_dimension_numbers<[1], [0], [0], [1], [0, 0, 1, 1], [], []>} : vector<64x4xf32>, vector<4x32xf32>, vector<64x32xf32> -> vector<64x32xf32>
    %c0_32 = arith.constant 0 : index
    %c0_33 = arith.constant 0 : index
    %33 = vector.load %arg13[%c0_32, %c0_33] : memref<32x32xf32, #tpu.memory_space<vmem>>, vector<32x32xf32>
    %cst_34 = arith.constant dense<0.000000e+00> : vector<64x32xf32>
    %34 = tpu.matmul %30, %33, %cst_34 {dimension_numbers = #tpu.dot_dimension_numbers<[1], [0], [0], [1], [0, 0, 1, 1], [], []>} : vector<64x32xf32>, vector<32x32xf32>, vector<64x32xf32> -> vector<64x32xf32>
    %35 = arith.addf %32, %34 : vector<64x32xf32>
    %c0_35 = arith.constant 0 : index
    %c0_36 = arith.constant 0 : index
    %36 = vector.load %arg14[%c0_35, %c0_36] : memref<1x32xf32, #tpu.memory_space<vmem>>, vector<1x32xf32>
    %37 = vector.broadcast %36 : vector<1x32xf32> to vector<64x32xf32>
    %38 = arith.addf %35, %37 : vector<64x32xf32>
    %cst_37 = arith.constant 0.000000e+00 : f32
    %39 = vector.broadcast %cst_37 : f32 to vector<64x32xf32>
    %40 = arith.maximumf %38, %39 : vector<64x32xf32>
    %c0_38 = arith.constant 0 : index
    %c0_39 = arith.constant 0 : index
    %41 = vector.load %arg15[%c0_38, %c0_39] : memref<32x32xf32, #tpu.memory_space<vmem>>, vector<32x32xf32>
    %cst_40 = arith.constant dense<0.000000e+00> : vector<64x32xf32>
    %42 = tpu.matmul %40, %41, %cst_40 {dimension_numbers = #tpu.dot_dimension_numbers<[1], [0], [0], [1], [0, 0, 1, 1], [], []>} : vector<64x32xf32>, vector<32x32xf32>, vector<64x32xf32> -> vector<64x32xf32>
    %c0_41 = arith.constant 0 : index
    %c0_42 = arith.constant 0 : index
    %43 = vector.load %arg16[%c0_41, %c0_42] : memref<1x32xf32, #tpu.memory_space<vmem>>, vector<1x32xf32>
    %44 = vector.broadcast %43 : vector<1x32xf32> to vector<64x32xf32>
    %45 = arith.addf %42, %44 : vector<64x32xf32>
    %cst_43 = arith.constant 0.000000e+00 : f32
    %46 = vector.broadcast %cst_43 : f32 to vector<64x32xf32>
    %47 = arith.maximumf %45, %46 : vector<64x32xf32>
    %c0_44 = arith.constant 0 : index
    %c0_45 = arith.constant 0 : index
    %48 = vector.load %arg17[%c0_44, %c0_45] : memref<32x4xf32, #tpu.memory_space<vmem>>, vector<32x4xf32>
    %cst_46 = arith.constant dense<0.000000e+00> : vector<64x4xf32>
    %49 = tpu.matmul %47, %48, %cst_46 {dimension_numbers = #tpu.dot_dimension_numbers<[1], [0], [0], [1], [0, 0, 1, 1], [], []>} : vector<64x32xf32>, vector<32x4xf32>, vector<64x4xf32> -> vector<64x4xf32>
    %c0_47 = arith.constant 0 : index
    %c0_48 = arith.constant 0 : index
    %50 = vector.load %arg18[%c0_47, %c0_48] : memref<1x4xf32, #tpu.memory_space<vmem>>, vector<1x4xf32>
    %51 = vector.broadcast %50 : vector<1x4xf32> to vector<64x4xf32>
    %52 = arith.addf %49, %51 : vector<64x4xf32>
    %53 = arith.addf %1, %52 : vector<64x4xf32>
    %c0_49 = arith.constant 0 : index
    %c0_50 = arith.constant 0 : index
    %c0_51 = arith.constant 0 : index
    %c0_52 = arith.constant 0 : index
    %54 = vector.load %arg19[%c0_49, %c0_50, %c0_51, %c0_52] : memref<1x1x64x4xf32, #tpu.memory_space<vmem>>, vector<1x1x64x4xf32>
    %55 = vector.shape_cast %54 : vector<1x1x64x4xf32> to vector<64x4xf32>
    %56 = vector.shape_cast %53 : vector<64x4xf32> to vector<1x1x64x4xf32>
    tpu.vector_store %arg19[%c0_49, %c0_50, %c0_51, %c0_52], %56 {strides = array<i32>} : memref<1x1x64x4xf32, #tpu.memory_space<vmem>>, vector<1x1x64x4xf32>,
    return
  }
  func.func @transform_0(%arg0: i32, %arg1: i32) -> (i32, i32, i32, i32) {
    %c0_i32 = arith.constant 0 : i32
    %c0_i32_0 = arith.constant 0 : i32
    %c0_i32_1 = arith.constant 0 : i32
    return %arg0, %arg1, %c0_i32, %c0_i32_0 : i32, i32, i32, i32
  }
  func.func @transform_1(%arg0: i32, %arg1: i32) -> (i32, i32, i32) {
    %c0_i32 = arith.constant 0 : i32
    %c0_i32_0 = arith.constant 0 : i32
    %c0_i32_1 = arith.constant 0 : i32
    return %arg0, %c0_i32, %c0_i32_0 : i32, i32, i32
  }
  func.func @transform_2(%arg0: i32, %arg1: i32) -> (i32, i32) {
    %c0_i32 = arith.constant 0 : i32
    %c0_i32_0 = arith.constant 0 : i32
    %c0_i32_1 = arith.constant 0 : i32
    return %c0_i32, %c0_i32_0 : i32, i32
  }
  func.func @transform_3(%arg0: i32, %arg1: i32) -> (i32, i32) {
    %c0_i32 = arith.constant 0 : i32
    %c0_i32_0 = arith.constant 0 : i32
    %c0_i32_1 = arith.constant 0 : i32
    return %c0_i32, %c0_i32_0 : i32, i32
  }
  func.func @transform_4(%arg0: i32, %arg1: i32) -> (i32, i32) {
    %c0_i32 = arith.constant 0 : i32
    %c0_i32_0 = arith.constant 0 : i32
    %c0_i32_1 = arith.constant 0 : i32
    return %c0_i32, %c0_i32_0 : i32, i32
  }
  func.func @transform_5(%arg0: i32, %arg1: i32) -> (i32, i32) {
    %c0_i32 = arith.constant 0 : i32
    %c0_i32_0 = arith.constant 0 : i32
    %c0_i32_1 = arith.constant 0 : i32
    return %c0_i32, %c0_i32_0 : i32, i32
  }
  func.func @transform_6(%arg0: i32, %arg1: i32) -> (i32, i32) {
    %c0_i32 = arith.constant 0 : i32
    %c0_i32_0 = arith.constant 0 : i32
    %c0_i32_1 = arith.constant 0 : i32
    return %c0_i32, %c0_i32_0 : i32, i32
  }
  func.func @transform_7(%arg0: i32, %arg1: i32) -> (i32, i32) {
    %c0_i32 = arith.constant 0 : i32
    %c0_i32_0 = arith.constant 0 : i32
    %c0_i32_1 = arith.constant 0 : i32
    return %c0_i32, %c0_i32_0 : i32, i32
  }
  func.func @transform_8(%arg0: i32, %arg1: i32) -> (i32, i32) {
    %c0_i32 = arith.constant 0 : i32
    %c0_i32_0 = arith.constant 0 : i32
    %c0_i32_1 = arith.constant 0 : i32
    return %c0_i32, %c0_i32_0 : i32, i32
  }
  func.func @transform_9(%arg0: i32, %arg1: i32) -> (i32, i32) {
    %c0_i32 = arith.constant 0 : i32
    %c0_i32_0 = arith.constant 0 : i32
    %c0_i32_1 = arith.constant 0 : i32
    return %c0_i32, %c0_i32_0 : i32, i32
  }
  func.func @transform_10(%arg0: i32, %arg1: i32) -> (i32, i32) {
    %c0_i32 = arith.constant 0 : i32
    %c0_i32_0 = arith.constant 0 : i32
    %c0_i32_1 = arith.constant 0 : i32
    return %c0_i32, %c0_i32_0 : i32, i32
  }
  func.func @transform_11(%arg0: i32, %arg1: i32) -> (i32, i32) {
    %c0_i32 = arith.constant 0 : i32
    %c0_i32_0 = arith.constant 0 : i32
    %c0_i32_1 = arith.constant 0 : i32
    return %c0_i32, %c0_i32_0 : i32, i32
  }
  func.func @transform_12(%arg0: i32, %arg1: i32) -> (i32, i32) {
    %c0_i32 = arith.constant 0 : i32
    %c0_i32_0 = arith.constant 0 : i32
    %c0_i32_1 = arith.constant 0 : i32
    return %c0_i32, %c0_i32_0 : i32, i32
  }
  func.func @transform_13(%arg0: i32, %arg1: i32) -> (i32, i32) {
    %c0_i32 = arith.constant 0 : i32
    %c0_i32_0 = arith.constant 0 : i32
    %c0_i32_1 = arith.constant 0 : i32
    return %c0_i32, %c0_i32_0 : i32, i32
  }
  func.func @transform_14(%arg0: i32, %arg1: i32) -> (i32, i32) {
    %c0_i32 = arith.constant 0 : i32
    %c0_i32_0 = arith.constant 0 : i32
    %c0_i32_1 = arith.constant 0 : i32
    return %c0_i32, %c0_i32_0 : i32, i32
  }
  func.func @transform_15(%arg0: i32, %arg1: i32) -> (i32, i32) {
    %c0_i32 = arith.constant 0 : i32
    %c0_i32_0 = arith.constant 0 : i32
    %c0_i32_1 = arith.constant 0 : i32
    return %c0_i32, %c0_i32_0 : i32, i32
  }
  func.func @transform_16(%arg0: i32, %arg1: i32) -> (i32, i32) {
    %c0_i32 = arith.constant 0 : i32
    %c0_i32_0 = arith.constant 0 : i32
    %c0_i32_1 = arith.constant 0 : i32
    return %c0_i32, %c0_i32_0 : i32, i32
  }
  func.func @transform_17(%arg0: i32, %arg1: i32) -> (i32, i32, i32, i32) {
    %c0_i32 = arith.constant 0 : i32
    %c0_i32_0 = arith.constant 0 : i32
    %c0_i32_1 = arith.constant 0 : i32
    return %arg0, %arg1, %c0_i32, %c0_i32_0 : i32, i32, i32, i32
  }
}

</mosaic_0001>

<bundles_post_ra>
// kernel: tpu_custom_call.1
= control target key start
LH: loop header
LB: loop body
LE: loop exit
PB: predicated region body
PF: predicated region fallthrough
CT: control target
= control target key end

     0   :  { %s6181_s24 = smov 0   ;;  %s6183_s25 = smov 0   ;;  %s7548_s0 = inlined_call_operand.vmem [shape: f32[2,1,64,4], index: 0, kind: input, shape index: {}]   ;;  %s7549_s1 = inlined_call_operand.vmem [shape: f32[2,56,2], index: 1, kind: input, shape index: {}]   ;;  %s7550_s2 = inlined_call_operand.vmem [shape: f32[448,64], index: 2, kind: input, shape index: {}]   ;;  %s7551_s3 = inlined_call_operand.vmem [shape: f32[448,64], index: 3, kind: input, shape index: {}]   ;;  %s7552_s4 = inlined_call_operand.vmem [shape: f32[64,448], index: 4, kind: input, shape index: {}]   ;;  %s7553_s5 = inlined_call_operand.vmem [shape: f32[4,32], index: 5, kind: input, shape index: {}]   ;;  %s7554_s6 = inlined_call_operand.vmem [shape: f32[4,32], index: 6, kind: input, shape index: {}]   ;;  %s7555_s7 = inlined_call_operand.vmem [shape: f32[1,32], index: 7, kind: input, shape index: {}]   ;;  %s7556_s8 = inlined_call_operand.vmem [shape: f32[32,32], index: 8, kind: input, shape index: {}]   ;;  %s7557_s9 = inlined_call_operand.vmem [shape: f32[1,32], index: 9, kind: input, shape index: {}]   ;;  %s7558_s10 = inlined_call_operand.vmem [shape: f32[4,32], index: 10, kind: input, shape index: {}]   ;;  %s7559_s11 = inlined_call_operand.vmem [shape: f32[32,32], index: 11, kind: input, shape index: {}]   ;;  %s7560_s12 = inlined_call_operand.vmem [shape: f32[1,32], index: 12, kind: input, shape index: {}]   ;;  %s7561_s13 = inlined_call_operand.vmem [shape: f32[32,32], index: 13, kind: input, shape index: {}]   ;;  %s7562_s14 = inlined_call_operand.vmem [shape: f32[1,32], index: 14, kind: input, shape index: {}]   ;;  %s7563_s15 = inlined_call_operand.vmem [shape: f32[32,4], index: 15, kind: input, shape index: {}]   ;;  %s7564_s16 = inlined_call_operand.vmem [shape: f32[1,4], index: 16, kind: input, shape index: {}]   ;;  %s7565_s17 = inlined_call_operand.vmem [shape: f32[2,1,64,4], index: 17, kind: output, shape index: {}]  }
   0x1   :  { %7567 = sst [smem:[#allocation2_spill]] %s7548_s0  ;;  %s6185_s26 = smov 0  }
   0x2   :  { %7568 = sst [smem:[#allocation3_spill]] %s7549_s1 }
   0x3 LB: > { %s39_s27 = sadd.s32 1, %s6083_s25  ;;  %p4553_p0 = scmp.ge.s32.totalorder %s6087_s26, 1  ;;  %s6087_s26 = sphi %s6185_s26, %s27_s26   ;;  %s6083_s25 = sphi %s6183_s25, %s7573_s25   ;;  %s6079_s24 = sphi %s6181_s24, %s7572_s24  }
   0x4   : > { %p41_p1 = scmp.ge.s32.totalorder %s39_s27, 2  ;;  %p517_p2 = scmp.lt.s32.totalorder %s6087_s26, 3 }
   0x6   : > { %s7575_s27 = smov (%p41_p1, %s39_s27), 0  ;;  %p518_p3 = pnand %p4553_p0, %p517_p2 }
   0x7   : > { %p582_p4 = scmp.lt.s32.totalorder (!%p518_p3), %s6079_s24, 1  ;;  %vm676_vm0 = vcmask (!%p518_p3), 523264   ;;  %v1190_v0 = vld [vmem:[%s7550_s2] sm:$0xff] (!%p518_p3)  ;;  %s7569_s19 = sld [smem:[#allocation2_spill]] (!%p518_p3)  ;;  %v1191_v14 = vld [vmem:[%s7550_s2 + $0x8] sm:$0xff] (!%p518_p3)  ;;  %v1192_v16 = vld [vmem:[%s7550_s2 + $0x10] sm:$0xff] (!%p518_p3) }
   0x8   : > { %521 = sbr.rel (%p518_p3) target bundleno = 1826 (0x722), region = 88  ;;  %5410 = vmatprep.mubr.msk.f32.mxu1 (!%p518_p3), %vm676_vm0, %v1190_v0  ;;  %v620_v13 = vld [vmem:[%s7551_s3] sm:$0xff] (!%p518_p3)  ;;  %v621_v15 = vld [vmem:[%s7551_s3 + $0x8] sm:$0xff] (!%p518_p3)  ;;  %v622_v17 = vld [vmem:[%s7551_s3 + $0x10] sm:$0xff] (!%p518_p3)  ;;  %vm1930_vm1 = vcmask (!%p518_p3), 1043456   ;;  %vm1761_vm2 = vcmask (!%p518_p3), 31744  }
   0x9   : > { %5310 = vmatprep.mubr.msk.f32.mxu0 (!%p518_p3), %vm676_vm0, %v620_v13  ;;  %v1193_v18 = vld [vmem:[%s7550_s2 + $0x18] sm:$0xff] (!%p518_p3)  ;;  %v1194_v20 = vld [vmem:[%s7550_s2 + $0x20] sm:$0xff] (!%p518_p3)  ;;  %v1195_v22 = vld [vmem:[%s7550_s2 + $0x28] sm:$0xff] (!%p518_p3)  ;;  %s7570_s30 = sld [smem:[#allocation3_spill]] (!%p518_p3)  ;;  %vm2925_vm3 = vcmask (!%p518_p3), 261120  }
   0xa   : > { %v623_v19 = vld [vmem:[%s7551_s3 + $0x18] sm:$0xff] (!%p518_p3)  ;;  %v624_v21 = vld [vmem:[%s7551_s3 + $0x20] sm:$0xff] (!%p518_p3)  ;;  %v625_v23 = vld [vmem:[%s7551_s3 + $0x28] sm:$0xff] (!%p518_p3) }
   0xb   : > { %v1196_v24 = vld [vmem:[%s7550_s2 + $0x30] sm:$0xff] (!%p518_p3)  ;;  %v1197_v26 = vld [vmem:[%s7550_s2 + $0x38] sm:$0xff] (!%p518_p3)  ;;  %v1198_v28 = vld [vmem:[%s7550_s2 + $0x40] sm:$0xff] (!%p518_p3) }
   0xc   : > { %v626_v25 = vld [vmem:[%s7551_s3 + $0x30] sm:$0xff] (!%p518_p3)  ;;  %v627_v27 = vld [vmem:[%s7551_s3 + $0x38] sm:$0xff] (!%p518_p3)  ;;  %v628_v29 = vld [vmem:[%s7551_s3 + $0x40] sm:$0xff] (!%p518_p3) }
   0xd   : > { %v1760_v30 = vld [vmem:[%s7554_s6] sm:$0xf] (!%p518_p3)  ;;  %v1199_v31 = vld [vmem:[%s7550_s2 + $0x48] sm:$0xff] (!%p518_p3)  ;;  %v1200_v33 = vld [vmem:[%s7550_s2 + $0x50] sm:$0xff] (!%p518_p3) }
   0xe   : > { %v629_v32 = vld [vmem:[%s7551_s3 + $0x48] sm:$0xff] (!%p518_p3)  ;;  %v630_v34 = vld [vmem:[%s7551_s3 + $0x50] sm:$0xff] (!%p518_p3)  ;;  %v1201_v35 = vld [vmem:[%s7550_s2 + $0x58] sm:$0xff] (!%p518_p3) }
   0xf   : > { %s7577_s24 = smov (!%p582_p4, %s6079_s24), 1  ;;  %v631_v36 = vld [vmem:[%s7551_s3 + $0x58] sm:$0xff]  ;;  %v1202_v37 = vld [vmem:[%s7550_s2 + $0x60] sm:$0xff]  ;;  %v1203_v39 = vld [vmem:[%s7550_s2 + $0x68] sm:$0xff] }
  0x10   : > { %s7566_s0 = sshll.u32 %s7577_s24, 6  ;;  %v632_v38 = vld [vmem:[%s7551_s3 + $0x60] sm:$0xff]  ;;  %v633_v40 = vld [vmem:[%s7551_s3 + $0x68] sm:$0xff]  ;;  %v1204_v41 = vld [vmem:[%s7550_s2 + $0x70] sm:$0xff]  ;;  %s6028_s28 = smul.u32 56, %s7577_s24 }
  0x11   : > { %s6211_s1 = scalar_lea.vmem %s7569_s19, %s7566_s0  ;;  %v634_v42 = vld [vmem:[%s7551_s3 + $0x70] sm:$0xff]  ;;  %v1205_v43 = vld [vmem:[%s7550_s2 + $0x78] sm:$0xff]  ;;  %v1206_v45 = vld [vmem:[%s7550_s2 + $0x80] sm:$0xff] }
  0x12   : > { %v605_v1 = vld [vmem:[%s6211_s1] sm:$0xff]  ;;  %v606_v2 = vld [vmem:[%s6211_s1 + $0x8] sm:$0xff]  ;;  %v607_v3 = vld [vmem:[%s6211_s1 + $0x10] sm:$0xff]  ;;  %s595_s18 = scalar_lea.vmem %s7570_s30, %s6028_s28  ;;  %s7571_s30 = sshll.u32 %s7577_s24, 6 }
  0x13   : > { %v5832_v4 = vpack.c.bf16 %v606_v2, %v605_v1  ;;  %v608_v5 = vld [vmem:[%s6211_s1 + $0x18] sm:$0xff]  ;;  %v609_v7 = vld [vmem:[%s6211_s1 + $0x20] sm:$0xff]  ;;  %v610_v8 = vld [vmem:[%s6211_s1 + $0x28] sm:$0xff]  ;;  %s604_s20 = scalar_lea.vmem %s7565_s17, %s7571_s30 }
  0x14   : > { %v5836_v6 = vpack.c.bf16 %v608_v5, %v607_v3  ;;  %v5840_v9 = vpack.c.bf16 %v610_v8, %v609_v7  ;;  %v611_v10 = vld [vmem:[%s6211_s1 + $0x30] sm:$0xff]  ;;  %v612_v11 = vld [vmem:[%s6211_s1 + $0x38] sm:$0xff]  ;;  %v636_v46 = vld [vmem:[%s7551_s3 + $0x80] sm:$0xff] }
  0x15   : > { %5849 = vmatprep.subr.bf16.mxu1 %v5832_v4  ;;  %5833 = vmatprep.subr.bf16.mxu0 %v5832_v4  ;;  %v5844_v12 = vpack.c.bf16 %v612_v11, %v611_v10  ;;  %v635_v44 = vld [vmem:[%s7551_s3 + $0x78] sm:$0xff]  ;;  %v1207_v47 = vld [vmem:[%s7550_s2 + $0x88] sm:$0xff]  ;;  %v1208_v49 = vld [vmem:[%s7550_s2 + $0x90] sm:$0xff] }
  0x16   : > { %5851 = vmatpush3.bf16.msra.mxu1 %v5832_v4  ;;  %5835 = vmatpush3.bf16.msra.mxu0 %v5832_v4  ;;  %v637_v48 = vld [vmem:[%s7551_s3 + $0x88] sm:$0xff]  ;;  %v638_v50 = vld [vmem:[%s7551_s3 + $0x90] sm:$0xff]  ;;  %v1209_v51 = vld [vmem:[%s7550_s2 + $0x98] sm:$0xff] }
  0x17   : > { %5853 = vmatprep.subr.bf16.mxu1 %v5836_v6  ;;  %5837 = vmatprep.subr.bf16.mxu0 %v5836_v6  ;;  %v639_v52 = vld [vmem:[%s7551_s3 + $0x98] sm:$0xff]  ;;  %v1210_v53 = vld [vmem:[%s7550_s2 + $0xa0] sm:$0xff]  ;;  %v1211_v55 = vld [vmem:[%s7550_s2 + $0xa8] sm:$0xff] }
  0x18   : > { %v640_v54 = vld [vmem:[%s7551_s3 + $0xa0] sm:$0xff]  ;;  %v641_v56 = vld [vmem:[%s7551_s3 + $0xa8] sm:$0xff]  ;;  %v1212_v57 = vld [vmem:[%s7550_s2 + $0xb0] sm:$0xff] }
  0x19   : > { %v642_v58 = vld [vmem:[%s7551_s3 + $0xb0] sm:$0xff]  ;;  %v1213_v59 = vld [vmem:[%s7550_s2 + $0xb8] sm:$0xff]  ;;  %v1214_v61 = vld [vmem:[%s7550_s2 + $0xc0] sm:$0xff] }
  0x1a   : > { %5855 = vmatpush3.bf16.msra.mxu1 %v5836_v6  ;;  %5839 = vmatpush3.bf16.msra.mxu0 %v5836_v6  ;;  %v643_v60 = vld [vmem:[%s7551_s3 + $0xb8] sm:$0xff]  ;;  %v644_v62 = vld [vmem:[%s7551_s3 + $0xc0] sm:$0xff]  ;;  %v1215_v63 = vld [vmem:[%s7550_s2 + $0xc8] sm:$0xff] }
  0x1b   : > { %5857 = vmatprep.subr.bf16.mxu1 %v5840_v9  ;;  %5841 = vmatprep.subr.bf16.mxu0 %v5840_v9  ;;  %v645_v0 = vld [vmem:[%s7551_s3 + $0xc8] sm:$0xff]  ;;  %v1216_v1 = vld [vmem:[%s7550_s2 + $0xd0] sm:$0xff]  ;;  %v1217_v3 = vld [vmem:[%s7550_s2 + $0xd8] sm:$0xff] }
  0x1c   : > { %v646_v2 = vld [vmem:[%s7551_s3 + $0xd0] sm:$0xff]  ;;  %v647_v4 = vld [vmem:[%s7551_s3 + $0xd8] sm:$0xff]  ;;  %v1218_v5 = vld [vmem:[%s7550_s2 + $0xe0] sm:$0xff] }
  0x1d   : > { %v648_v6 = vld [vmem:[%s7551_s3 + $0xe0] sm:$0xff]  ;;  %v1219_v7 = vld [vmem:[%s7550_s2 + $0xe8] sm:$0xff]  ;;  %v650_v10 = vld [vmem:[%s7551_s3 + $0xf0] sm:$0xff] }
  0x1e   : > { %5859 = vmatpush3.bf16.msra.mxu1 %v5840_v9  ;;  %5843 = vmatpush3.bf16.msra.mxu0 %v5840_v9  ;;  %v649_v8 = vld [vmem:[%s7551_s3 + $0xe8] sm:$0xff]  ;;  %v1220_v9 = vld [vmem:[%s7550_s2 + $0xf0] sm:$0xff]  ;;  %v1221_v11 = vld [vmem:[%s7550_s2 + $0xf8] sm:$0xff] }
  0x1f   : > { %5861 = vmatprep.subr.bf16.mxu1 %v5844_v12  ;;  %5845 = vmatprep.subr.bf16.mxu0 %v5844_v12  ;;  %v1222_v13 = vld [vmem:[%s7550_s2 + $0x100] sm:$0xff] }
  0x22   : > { %5863 = vmatpush3.bf16.msra.mxu1 %v5844_v12  ;;  %5847 = vmatpush3.bf16.msra.mxu0 %v5844_v12  ;;  %v651_v12 = vld [vmem:[%s7551_s3 + $0xf8] sm:$0xff] }
  0x23   : > { %5494 = vmatprep.subr.msk.mxu0 %vm1930_vm1, %v1760_v30 }
  0x25   : > { %5411 = vmatmul.mubr.msk.f32.vlgmr.msra.gmra.mrb[0].mxu1 %vm676_vm0, %v1191_v14  ;;  %5311 = vmatmul.mubr.msk.f32.vlgmr.msra.gmra.mrb[0].mxu0 %vm676_vm0, %v621_v15  ;;  %v652_v14 = vld [vmem:[%s7551_s3 + $0x100] sm:$0xff]  ;;  %v1223_v15 = vld [vmem:[%s7550_s2 + $0x108] sm:$0xff] }
  0x26   : > { %5413 = vmatprep.mubr.msk.f32.mxu1 %vm676_vm0, %v1192_v16  ;;  %5313 = vmatprep.mubr.msk.f32.mxu0 %vm676_vm0, %v622_v17  ;;  %v653_v16 = vld [vmem:[%s7551_s3 + $0x108] sm:$0xff]  ;;  %v1224_v17 = vld [vmem:[%s7550_s2 + $0x110] sm:$0xff] }
  0x27   : > { %5495 = vmatpush3.msk.msra.mxu0 %vm1930_vm1, %v1760_v30  ;;  %v660_v30 = vld [vmem:[%s7551_s3 + $0x140] sm:$0xff] }
  0x29   : > { %5414 = vmatmul.mubr.msk.f32.gmra.mrb[2].mxu1 %vm676_vm0, %v1193_v18  ;;  %5314 = vmatmul.mubr.msk.f32.gmra.mrb[2].mxu0 %vm676_vm0, %v623_v19  ;;  %v654_v18 = vld [vmem:[%s7551_s3 + $0x110] sm:$0xff]  ;;  %v1225_v19 = vld [vmem:[%s7550_s2 + $0x118] sm:$0xff] }
  0x2a   : > { %5416 = vmatprep.mubr.msk.f32.mxu1 %vm676_vm0, %v1194_v20  ;;  %5316 = vmatprep.mubr.msk.f32.mxu0 %vm676_vm0, %v624_v21  ;;  %v655_v20 = vld [vmem:[%s7551_s3 + $0x118] sm:$0xff]  ;;  %v1226_v21 = vld [vmem:[%s7550_s2 + $0x120] sm:$0xff] }
  0x2d   : > { %5417 = vmatmul.mubr.msk.f32.gmra.mrb[4].mxu1 %vm676_vm0, %v1195_v22  ;;  %5317 = vmatmul.mubr.msk.f32.gmra.mrb[4].mxu0 %vm676_vm0, %v625_v23  ;;  %v656_v22 = vld [vmem:[%s7551_s3 + $0x120] sm:$0xff]  ;;  %v1227_v23 = vld [vmem:[%s7550_s2 + $0x128] sm:$0xff] }
  0x2e   : > { %5419 = vmatprep.mubr.msk.f32.mxu1 %vm676_vm0, %v1196_v24  ;;  %5319 = vmatprep.mubr.msk.f32.mxu0 %vm676_vm0, %v626_v25  ;;  %v657_v24 = vld [vmem:[%s7551_s3 + $0x128] sm:$0xff]  ;;  %v1228_v25 = vld [vmem:[%s7550_s2 + $0x130] sm:$0xff] }
  0x31   : > { %5420 = vmatmul.mubr.msk.f32.gmra.mrb[6].mxu1 %vm676_vm0, %v1197_v26  ;;  %5320 = vmatmul.mubr.msk.f32.gmra.mrb[6].mxu0 %vm676_vm0, %v627_v27  ;;  %v658_v26 = vld [vmem:[%s7551_s3 + $0x130] sm:$0xff]  ;;  %v1229_v27 = vld [vmem:[%s7550_s2 + $0x138] sm:$0xff] }
  0x32   : > { %5422 = vmatprep.mubr.msk.f32.mxu1 %vm676_vm0, %v1198_v28  ;;  %5322 = vmatprep.mubr.msk.f32.mxu0 %vm676_vm0, %v628_v29  ;;  %v659_v28 = vld [vmem:[%s7551_s3 + $0x138] sm:$0xff]  ;;  %v1230_v29 = vld [vmem:[%s7550_s2 + $0x140] sm:$0xff] }
  0x35   : > { %5423 = vmatmul.mubr.msk.f32.gmra.mrb[8].mxu1 %vm676_vm0, %v1199_v31  ;;  %5323 = vmatmul.mubr.msk.f32.gmra.mrb[8].mxu0 %vm676_vm0, %v629_v32  ;;  %v1231_v31 = vld [vmem:[%s7550_s2 + $0x148] sm:$0xff] }
  0x36   : > { %5425 = vmatprep.mubr.msk.f32.mxu1 %vm676_vm0, %v1200_v33  ;;  %5325 = vmatprep.mubr.msk.f32.mxu0 %vm676_vm0, %v630_v34  ;;  %v661_v32 = vld [vmem:[%s7551_s3 + $0x148] sm:$0xff]  ;;  %v1232_v33 = vld [vmem:[%s7550_s2 + $0x150] sm:$0xff] }
  0x37   : > { %v662_v34 = vld [vmem:[%s7551_s3 + $0x150] sm:$0xff] }
  0x39   : > { %5426 = vmatmul.mubr.msk.f32.gmra.mrb[10].mxu1 %vm676_vm0, %v1201_v35  ;;  %5326 = vmatmul.mubr.msk.f32.gmra.mrb[10].mxu0 %vm676_vm0, %v631_v36  ;;  %v1233_v35 = vld [vmem:[%s7550_s2 + $0x158] sm:$0xff] }
  0x3a   : > { %5428 = vmatprep.mubr.msk.f32.mxu1 %vm676_vm0, %v1202_v37  ;;  %5328 = vmatprep.mubr.msk.f32.mxu0 %vm676_vm0, %v632_v38  ;;  %v663_v36 = vld [vmem:[%s7551_s3 + $0x158] sm:$0xff]  ;;  %v1234_v37 = vld [vmem:[%s7550_s2 + $0x160] sm:$0xff] }
  0x3b   : > { %v664_v38 = vld [vmem:[%s7551_s3 + $0x160] sm:$0xff] }
  0x3d   : > { %5429 = vmatmul.mubr.msk.f32.gmra.mrb[12].mxu1 %vm676_vm0, %v1203_v39  ;;  %5329 = vmatmul.mubr.msk.f32.gmra.mrb[12].mxu0 %vm676_vm0, %v633_v40  ;;  %v1235_v39 = vld [vmem:[%s7550_s2 + $0x168] sm:$0xff] }
  0x3e   : > { %5431 = vmatprep.mubr.msk.f32.mxu1 %vm676_vm0, %v1204_v41  ;;  %5331 = vmatprep.mubr.msk.f32.mxu0 %vm676_vm0, %v634_v42  ;;  %v665_v40 = vld [vmem:[%s7551_s3 + $0x168] sm:$0xff]  ;;  %v1236_v41 = vld [vmem:[%s7550_s2 + $0x170] sm:$0xff] }
  0x3f   : > { %v666_v42 = vld [vmem:[%s7551_s3 + $0x170] sm:$0xff] }
  0x41   : > { %5432 = vmatmul.mubr.msk.f32.gmra.mrb[14].mxu1 %vm676_vm0, %v1205_v43  ;;  %5332 = vmatmul.mubr.msk.f32.gmra.mrb[14].mxu0 %vm676_vm0, %v635_v44  ;;  %v1237_v43 = vld [vmem:[%s7550_s2 + $0x178] sm:$0xff] }
  0x42   : > { %5434 = vmatprep.mubr.msk.f32.mxu1 %vm676_vm0, %v1206_v45  ;;  %5334 = vmatprep.mubr.msk.f32.mxu0 %vm676_vm0, %v636_v46  ;;  %v667_v44 = vld [vmem:[%s7551_s3 + $0x178] sm:$0xff]  ;;  %v1238_v45 = vld [vmem:[%s7550_s2 + $0x180] sm:$0xff] }
  0x43   : > { %v668_v46 = vld [vmem:[%s7551_s3 + $0x180] sm:$0xff] }
  0x45   : > { %5435 = vmatmul.mubr.msk.f32.gmra.mrb[16].mxu1 %vm676_vm0, %v1207_v47  ;;  %5335 = vmatmul.mubr.msk.f32.gmra.mrb[16].mxu0 %vm676_vm0, %v637_v48  ;;  %v1239_v47 = vld [vmem:[%s7550_s2 + $0x188] sm:$0xff] }
  0x46   : > { %5437 = vmatprep.mubr.msk.f32.mxu1 %vm676_vm0, %v1208_v49  ;;  %5337 = vmatprep.mubr.msk.f32.mxu0 %vm676_vm0, %v638_v50  ;;  %v669_v48 = vld [vmem:[%s7551_s3 + $0x188] sm:$0xff]  ;;  %v1240_v49 = vld [vmem:[%s7550_s2 + $0x190] sm:$0xff] }
  0x47   : > { %v670_v50 = vld [vmem:[%s7551_s3 + $0x190] sm:$0xff] }
  0x49   : > { %5438 = vmatmul.mubr.msk.f32.gmra.mrb[18].mxu1 %vm676_vm0, %v1209_v51  ;;  %5338 = vmatmul.mubr.msk.f32.gmra.mrb[18].mxu0 %vm676_vm0, %v639_v52  ;;  %v1241_v51 = vld [vmem:[%s7550_s2 + $0x198] sm:$0xff] }
  0x4a   : > { %5440 = vmatprep.mubr.msk.f32.mxu1 %vm676_vm0, %v1210_v53  ;;  %5340 = vmatprep.mubr.msk.f32.mxu0 %vm676_vm0, %v640_v54  ;;  %v671_v52 = vld [vmem:[%s7551_s3 + $0x198] sm:$0xff]  ;;  %v1242_v53 = vld [vmem:[%s7550_s2 + $0x1a0] sm:$0xff] }
  0x4b   : > { %v672_v54 = vld [vmem:[%s7551_s3 + $0x1a0] sm:$0xff] }
  0x4d   : > { %5441 = vmatmul.mubr.msk.f32.gmra.mrb[20].mxu1 %vm676_vm0, %v1211_v55  ;;  %5341 = vmatmul.mubr.msk.f32.gmra.mrb[20].mxu0 %vm676_vm0, %v641_v56  ;;  %v1243_v55 = vld [vmem:[%s7550_s2 + $0x1a8] sm:$0xff] }
  0x4e   : > { %5443 = vmatprep.mubr.msk.f32.mxu1 %vm676_vm0, %v1212_v57  ;;  %5343 = vmatprep.mubr.msk.f32.mxu0 %vm676_vm0, %v642_v58  ;;  %v673_v56 = vld [vmem:[%s7551_s3 + $0x1a8] sm:$0xff]  ;;  %v1244_v57 = vld [vmem:[%s7550_s2 + $0x1b0] sm:$0xff] }
  0x4f   : > { %v674_v58 = vld [vmem:[%s7551_s3 + $0x1b0] sm:$0xff] }
  0x51   : > { %5444 = vmatmul.mubr.msk.f32.gmra.mrb[22].mxu1 %vm676_vm0, %v1213_v59  ;;  %5344 = vmatmul.mubr.msk.f32.gmra.mrb[22].mxu0 %vm676_vm0, %v643_v60  ;;  %v1245_v59 = vld [vmem:[%s7550_s2 + $0x1b8] sm:$0xff] }
  0x52   : > { %5446 = vmatprep.mubr.msk.f32.mxu1 %vm676_vm0, %v1214_v61  ;;  %5346 = vmatprep.mubr.msk.f32.mxu0 %vm676_vm0, %v644_v62  ;;  %v675_v60 = vld [vmem:[%s7551_s3 + $0x1b8] sm:$0xff]  ;;  %v1759_v61 = vld [vmem:[%s7553_s5] sm:$0xf] }
  0x53   : > { %5580 = vmatprep.subr.msk.mxu0 %vm1930_vm1, %v1759_v61 }
  0x55   : > { %5447 = vmatmul.mubr.msk.f32.gmra.mrb[24].mxu1 %vm676_vm0, %v1215_v63  ;;  %5347 = vmatmul.mubr.msk.f32.gmra.mrb[24].mxu0 %vm676_vm0, %v645_v0 }
  0x56   : > { %5449 = vmatprep.mubr.msk.f32.mxu1 %vm676_vm0, %v1216_v1  ;;  %5349 = vmatprep.mubr.msk.f32.mxu0 %vm676_vm0, %v646_v2 }
  0x59   : > { %5450 = vmatmul.mubr.msk.f32.gmra.mrb[26].mxu1 %vm676_vm0, %v1217_v3  ;;  %5350 = vmatmul.mubr.msk.f32.gmra.mrb[26].mxu0 %vm676_vm0, %v647_v4 }
  0x5a   : > { %5452 = vmatprep.mubr.msk.f32.mxu1 %vm676_vm0, %v1218_v5  ;;  %5352 = vmatprep.mubr.msk.f32.mxu0 %vm676_vm0, %v648_v6 }
  0x5d   : > { %5453 = vmatmul.mubr.msk.f32.gmra.mrb[28].mxu1 %vm676_vm0, %v1219_v7  ;;  %5353 = vmatmul.mubr.msk.f32.gmra.mrb[28].mxu0 %vm676_vm0, %v649_v8 }
  0x5e   : > { %5455 = vmatprep.mubr.msk.f32.mxu1 %vm676_vm0, %v1220_v9  ;;  %5355 = vmatprep.mubr.msk.f32.mxu0 %vm676_vm0, %v650_v10 }
  0x61   : > { %5456 = vmatmul.mubr.msk.f32.gmra.mrb[30].mxu1 %vm676_vm0, %v1221_v11  ;;  %5356 = vmatmul.mubr.msk.f32.gmra.mrb[30].mxu0 %vm676_vm0, %v651_v12 }
  0x62   : > { %5458 = vmatprep.mubr.msk.f32.mxu1 %vm676_vm0, %v1222_v13  ;;  %5358 = vmatprep.mubr.msk.f32.mxu0 %vm676_vm0, %v652_v14 }
  0x65   : > { %5459 = vmatmul.mubr.msk.f32.gmra.mrb[32].mxu1 %vm676_vm0, %v1223_v15  ;;  %5359 = vmatmul.mubr.msk.f32.gmra.mrb[32].mxu0 %vm676_vm0, %v653_v16 }
  0x66   : > { %5461 = vmatprep.mubr.msk.f32.mxu1 %vm676_vm0, %v1224_v17  ;;  %5361 = vmatprep.mubr.msk.f32.mxu0 %vm676_vm0, %v654_v18 }
  0x69   : > { %5462 = vmatmul.mubr.msk.f32.gmra.mrb[34].mxu1 %vm676_vm0, %v1225_v19  ;;  %5362 = vmatmul.mubr.msk.f32.gmra.mrb[34].mxu0 %vm676_vm0, %v655_v20 }
  0x6a   : > { %5464 = vmatprep.mubr.msk.f32.mxu1 %vm676_vm0, %v1226_v21  ;;  %5364 = vmatprep.mubr.msk.f32.mxu0 %vm676_vm0, %v656_v22 }
  0x6d   : > { %5465 = vmatmul.mubr.msk.f32.gmra.mrb[36].mxu1 %vm676_vm0, %v1227_v23  ;;  %5365 = vmatmul.mubr.msk.f32.gmra.mrb[36].mxu0 %vm676_vm0, %v657_v24 }
  0x6e   : > { %5467 = vmatprep.mubr.msk.f32.mxu1 %vm676_vm0, %v1228_v25  ;;  %5367 = vmatprep.mubr.msk.f32.mxu0 %vm676_vm0, %v658_v26 }
  0x71   : > { %5468 = vmatmul.mubr.msk.f32.gmra.mrb[38].mxu1 %vm676_vm0, %v1229_v27  ;;  %5368 = vmatmul.mubr.msk.f32.gmra.mrb[38].mxu0 %vm676_vm0, %v659_v28 }
  0x72   : > { %5470 = vmatprep.mubr.msk.f32.mxu1 %vm676_vm0, %v1230_v29  ;;  %5370 = vmatprep.mubr.msk.f32.mxu0 %vm676_vm0, %v660_v30 }
  0x75   : > { %5471 = vmatmul.mubr.msk.f32.gmra.mrb[40].mxu1 %vm676_vm0, %v1231_v31  ;;  %5371 = vmatmul.mubr.msk.f32.gmra.mrb[40].mxu0 %vm676_vm0, %v661_v32 }
  0x76   : > { %5473 = vmatprep.mubr.msk.f32.mxu1 %vm676_vm0, %v1232_v33  ;;  %5373 = vmatprep.mubr.msk.f32.mxu0 %vm676_vm0, %v662_v34 }
  0x79   : > { %5474 = vmatmul.mubr.msk.f32.gmra.mrb[42].mxu1 %vm676_vm0, %v1233_v35  ;;  %5374 = vmatmul.mubr.msk.f32.gmra.mrb[42].mxu0 %vm676_vm0, %v663_v36 }
  0x7a   : > { %5476 = vmatprep.mubr.msk.f32.mxu1 %vm676_vm0, %v1234_v37  ;;  %5376 = vmatprep.mubr.msk.f32.mxu0 %vm676_vm0, %v664_v38 }
  0x7d   : > { %5477 = vmatmul.mubr.msk.f32.gmra.mrb[44].mxu1 %vm676_vm0, %v1235_v39  ;;  %5377 = vmatmul.mubr.msk.f32.gmra.mrb[44].mxu0 %vm676_vm0, %v665_v40 }
  0x7e   : > { %5479 = vmatprep.mubr.msk.f32.mxu1 %vm676_vm0, %v1236_v41  ;;  %5379 = vmatprep.mubr.msk.f32.mxu0 %vm676_vm0, %v666_v42 }
  0x81   : > { %5480 = vmatmul.mubr.msk.f32.gmra.mrb[46].mxu1 %vm676_vm0, %v1237_v43  ;;  %5380 = vmatmul.mubr.msk.f32.gmra.mrb[46].mxu0 %vm676_vm0, %v667_v44 }
  0x82   : > { %5482 = vmatprep.mubr.msk.f32.mxu1 %vm676_vm0, %v1238_v45  ;;  %5382 = vmatprep.mubr.msk.f32.mxu0 %vm676_vm0, %v668_v46 }
  0x85   : > { %5483 = vmatmul.mubr.msk.f32.gmra.mrb[48].mxu1 %vm676_vm0, %v1239_v47  ;;  %5383 = vmatmul.mubr.msk.f32.gmra.mrb[48].mxu0 %vm676_vm0, %v669_v48 }
  0x86   : > { %5485 = vmatprep.mubr.msk.f32.mxu1 %vm676_vm0, %v1240_v49  ;;  %5385 = vmatprep.mubr.msk.f32.mxu0 %vm676_vm0, %v670_v50 }
  0x89   : > { %5486 = vmatmul.mubr.msk.f32.gmra.mrb[50].mxu1 %vm676_vm0, %v1241_v51  ;;  %5386 = vmatmul.mubr.msk.f32.gmra.mrb[50].mxu0 %vm676_vm0, %v671_v52 }
  0x8a   : > { %5488 = vmatprep.mubr.msk.f32.mxu1 %vm676_vm0, %v1242_v53  ;;  %5388 = vmatprep.mubr.msk.f32.mxu0 %vm676_vm0, %v672_v54 }
  0x8d   : > { %5489 = vmatmul.mubr.msk.f32.gmra.mrb[52].mxu1 %vm676_vm0, %v1243_v55  ;;  %5389 = vmatmul.mubr.msk.f32.gmra.mrb[52].mxu0 %vm676_vm0, %v673_v56 }
  0x8e   : > { %5491 = vmatprep.mubr.msk.f32.mxu1 %vm676_vm0, %v1244_v57  ;;  %5391 = vmatprep.mubr.msk.f32.mxu0 %vm676_vm0, %v674_v58 }
  0x91   : > { %5492 = vmatmul.mubr.msk.f32.gmra.mrb[54].mxu1 %vm676_vm0, %v1245_v59  ;;  %5392 = vmatmul.mubr.msk.f32.gmra.mrb[54].mxu0 %vm676_vm0, %v675_v60 }
  0xf8   : > { %v5412_v62 = vpop.f32.mrb[0].mxu1  ;;  %v6674_v63 = vpop.f32.mrb[0].mxu0 }
  0xf9   : > { %v1480_v0 = vpop.f32.mrb[1].mxu1  ;;  %v6676_v1 = vpop.f32.mrb[1].mxu0 }
  0xfa   : > { %5496 = vmatprep.mubr.msk.f32.mxu0 %vm1761_vm2, %v1480_v0 }
  0xfb   : > { %5497 = vmatmul.mubr.msk.f32.vlgmr.msra.gmra.mrb[56].mxu0 %vm1761_vm2, %v5412_v62 }
  0xfc   : > { %v5415_v2 = vpop.f32.mrb[2].mxu1  ;;  %5581 = vmatpush3.msk.msra.mxu0 %vm1930_vm1, %v1759_v61  ;;  %v6681_v3 = vpop.f32.mrb[2].mxu0 }
  0xfd   : > { %v1490_v4 = vpop.f32.mrb[3].mxu1  ;;  %v6683_v5 = vpop.f32.mrb[3].mxu0 }
  0xfe   : > { %5499 = vmatprep.mubr.msk.f32.mxu0 %vm1761_vm2, %v1490_v4 }
  0xff   : > { %5500 = vmatmul.mubr.msk.f32.gmra.mrb[58].mxu0 %vm1761_vm2, %v5415_v2 }
 0x100   : > { %v5418_v6 = vpop.f32.mrb[4].mxu1  ;;  %v6687_v7 = vpop.f32.mrb[4].mxu0 }
 0x101   : > { %v1500_v8 = vpop.f32.mrb[5].mxu1  ;;  %v6689_v9 = vpop.f32.mrb[5].mxu0 }
 0x102   : > { %5502 = vmatprep.mubr.msk.f32.mxu0 %vm1761_vm2, %v1500_v8 }
 0x103   : > { %5503 = vmatmul.mubr.msk.f32.gmra.mrb[60].mxu0 %vm1761_vm2, %v5418_v6 }
 0x104   : > { %v5421_v10 = vpop.f32.mrb[6].mxu1  ;;  %v6693_v11 = vpop.f32.mrb[6].mxu0 }
 0x105   : > { %v1510_v12 = vpop.f32.mrb[7].mxu1  ;;  %v6695_v13 = vpop.f32.mrb[7].mxu0 }
 0x106   : > { %5505 = vmatprep.mubr.msk.f32.mxu0 %vm1761_vm2, %v1510_v12 }
 0x107   : > { %5506 = vmatmul.mubr.msk.f32.gmra.mrb[62].mxu0 %vm1761_vm2, %v5421_v10 }
 0x108   : > { %v5424_v14 = vpop.f32.mrb[8].mxu1  ;;  %v6699_v15 = vpop.f32.mrb[8].mxu0 }
 0x109   : > { %v1520_v16 = vpop.f32.mrb[9].mxu1  ;;  %v6701_v17 = vpop.f32.mrb[9].mxu0 }
 0x10a   : > { %5508 = vmatprep.mubr.msk.f32.mxu0 %vm1761_vm2, %v1520_v16 }
 0x10b   : > { %5509 = vmatmul.mubr.msk.f32.gmra.mrb[64].mxu0 %vm1761_vm2, %v5424_v14 }
 0x10c   : > { %v5427_v18 = vpop.f32.mrb[10].mxu1  ;;  %v6705_v19 = vpop.f32.mrb[10].mxu0 }
 0x10d   : > { %v1530_v20 = vpop.f32.mrb[11].mxu1  ;;  %v6707_v21 = vpop.f32.mrb[11].mxu0 }
 0x10e   : > { %5511 = vmatprep.mubr.msk.f32.mxu0 %vm1761_vm2, %v1530_v20 }
 0x10f   : > { %5512 = vmatmul.mubr.msk.f32.gmra.mrb[66].mxu0 %vm1761_vm2, %v5427_v18 }
 0x110   : > { %v5430_v22 = vpop.f32.mrb[12].mxu1  ;;  %v6711_v23 = vpop.f32.mrb[12].mxu0 }
 0x111   : > { %v1540_v24 = vpop.f32.mrb[13].mxu1  ;;  %v6713_v25 = vpop.f32.mrb[13].mxu0 }
 0x112   : > { %5514 = vmatprep.mubr.msk.f32.mxu0 %vm1761_vm2, %v1540_v24 }
 0x113   : > { %5515 = vmatmul.mubr.msk.f32.gmra.mrb[68].mxu0 %vm1761_vm2, %v5430_v22 }
 0x114   : > { %v5433_v26 = vpop.f32.mrb[14].mxu1  ;;  %v6717_v27 = vpop.f32.mrb[14].mxu0 }
 0x115   : > { %v1550_v28 = vpop.f32.mrb[15].mxu1  ;;  %v6719_v29 = vpop.f32.mrb[15].mxu0 }
 0x116   : > { %5517 = vmatprep.mubr.msk.f32.mxu0 %vm1761_vm2, %v1550_v28 }
 0x117   : > { %5518 = vmatmul.mubr.msk.f32.gmra.mrb[70].mxu0 %vm1761_vm2, %v5433_v26 }
 0x118   : > { %v5436_v30 = vpop.f32.mrb[16].mxu1  ;;  %v6723_v31 = vpop.f32.mrb[16].mxu0 }
 0x119   : > { %v1560_v32 = vpop.f32.mrb[17].mxu1  ;;  %v6725_v33 = vpop.f32.mrb[17].mxu0 }
 0x11a   : > { %5520 = vmatprep.mubr.msk.f32.mxu0 %vm1761_vm2, %v1560_v32 }
 0x11b   : > { %5521 = vmatmul.mubr.msk.f32.gmra.mrb[72].mxu0 %vm1761_vm2, %v5436_v30 }
 0x11c   : > { %v5439_v34 = vpop.f32.mrb[18].mxu1  ;;  %v6729_v35 = vpop.f32.mrb[18].mxu0 }
 0x11d   : > { %v1570_v36 = vpop.f32.mrb[19].mxu1  ;;  %v6731_v37 = vpop.f32.mrb[19].mxu0 }
 0x11e   : > { %5523 = vmatprep.mubr.msk.f32.mxu0 %vm1761_vm2, %v1570_v36 }
 0x11f   : > { %5524 = vmatmul.mubr.msk.f32.gmra.mrb[74].mxu0 %vm1761_vm2, %v5439_v34 }
 0x120   : > { %v5442_v38 = vpop.f32.mrb[20].mxu1  ;;  %v6735_v39 = vpop.f32.mrb[20].mxu0 }
 0x121   : > { %v1580_v40 = vpop.f32.mrb[21].mxu1  ;;  %v6737_v41 = vpop.f32.mrb[21].mxu0 }
 0x122   : > { %5526 = vmatprep.mubr.msk.f32.mxu0 %vm1761_vm2, %v1580_v40 }
 0x123   : > { %5527 = vmatmul.mubr.msk.f32.gmra.mrb[76].mxu0 %vm1761_vm2, %v5442_v38 }
 0x124   : > { %v5445_v42 = vpop.f32.mrb[22].mxu1  ;;  %v6741_v43 = vpop.f32.mrb[22].mxu0 }
 0x125   : > { %v1590_v44 = vpop.f32.mrb[23].mxu1  ;;  %v6743_v45 = vpop.f32.mrb[23].mxu0 }
 0x126   : > { %5529 = vmatprep.mubr.msk.f32.mxu0 %vm1761_vm2, %v1590_v44 }
 0x127   : > { %5530 = vmatmul.mubr.msk.f32.gmra.mrb[78].mxu0 %vm1761_vm2, %v5445_v42 }
 0x128   : > { %v5448_v46 = vpop.f32.mrb[24].mxu1  ;;  %v6747_v47 = vpop.f32.mrb[24].mxu0 }
 0x129   : > { %v1600_v48 = vpop.f32.mrb[25].mxu1  ;;  %v6749_v49 = vpop.f32.mrb[25].mxu0 }
 0x12a   : > { %5532 = vmatprep.mubr.msk.f32.mxu0 %vm1761_vm2, %v1600_v48 }
 0x12b   : > { %5533 = vmatmul.mubr.msk.f32.gmra.mrb[80].mxu0 %vm1761_vm2, %v5448_v46 }
 0x12c   : > { %v5451_v50 = vpop.f32.mrb[26].mxu1  ;;  %v6753_v51 = vpop.f32.mrb[26].mxu0 }
 0x12d   : > { %v1610_v52 = vpop.f32.mrb[27].mxu1  ;;  %v6755_v53 = vpop.f32.mrb[27].mxu0 }
 0x12e   : > { %5535 = vmatprep.mubr.msk.f32.mxu0 %vm1761_vm2, %v1610_v52 }
 0x12f   : > { %5536 = vmatmul.mubr.msk.f32.gmra.mrb[82].mxu0 %vm1761_vm2, %v5451_v50 }
 0x130   : > { %v5454_v54 = vpop.f32.mrb[28].mxu1  ;;  %v6759_v55 = vpop.f32.mrb[28].mxu0 }
 0x131   : > { %v1620_v56 = vpop.f32.mrb[29].mxu1  ;;  %v6761_v57 = vpop.f32.mrb[29].mxu0 }
 0x132   : > { %5538 = vmatprep.mubr.msk.f32.mxu0 %vm1761_vm2, %v1620_v56 }
 0x133   : > { %5539 = vmatmul.mubr.msk.f32.gmra.mrb[84].mxu0 %vm1761_vm2, %v5454_v54 }
 0x134   : > { %v5457_v58 = vpop.f32.mrb[30].mxu1  ;;  %v6765_v59 = vpop.f32.mrb[30].mxu0 }
 0x135   : > { %v1630_v60 = vpop.f32.mrb[31].mxu1  ;;  %v6767_v61 = vpop.f32.mrb[31].mxu0 }
 0x136   : > { %5541 = vmatprep.mubr.msk.f32.mxu0 %vm1761_vm2, %v1630_v60 }
 0x137   : > { %5542 = vmatmul.mubr.msk.f32.gmra.mrb[86].mxu0 %vm1761_vm2, %v5457_v58 }
 0x138   : > { %v5460_v62 = vpop.f32.mrb[32].mxu1  ;;  %v6771_v0 = vpop.f32.mrb[32].mxu0 }
 0x139   : > { %v1640_v2 = vpop.f32.mrb[33].mxu1  ;;  %v6773_v4 = vpop.f32.mrb[33].mxu0 }
 0x13a   : > { %5544 = vmatprep.mubr.msk.f32.mxu0 %vm1761_vm2, %v1640_v2  ;;  %v2915_v2 = vld [vmem:[%s7556_s8 + $0x8] sm:$0xff] }
 0x13b   : > { %5545 = vmatmul.mubr.msk.f32.gmra.mrb[88].mxu0 %vm1761_vm2, %v5460_v62  ;;  %v2914_v62 = vld [vmem:[%s7556_s8] sm:$0xff] }
 0x13c   : > { %v5463_v6 = vpop.f32.mrb[34].mxu1  ;;  %v6777_v8 = vpop.f32.mrb[34].mxu0 }
 0x13d   : > { %v1650_v10 = vpop.f32.mrb[35].mxu1  ;;  %v6779_v12 = vpop.f32.mrb[35].mxu0 }
 0x13e   : > { %5547 = vmatprep.mubr.msk.f32.mxu0 %vm1761_vm2, %v1650_v10 }
 0x13f   : > { %5548 = vmatmul.mubr.msk.f32.gmra.mrb[90].mxu0 %vm1761_vm2, %v5463_v6 }
 0x140   : > { %v5466_v14 = vpop.f32.mrb[36].mxu1  ;;  %v6783_v16 = vpop.f32.mrb[36].mxu0 }
 0x141   : > { %v1660_v18 = vpop.f32.mrb[37].mxu1  ;;  %v6785_v20 = vpop.f32.mrb[37].mxu0 }
 0x142   : > { %5550 = vmatprep.mubr.msk.f32.mxu0 %vm1761_vm2, %v1660_v18 }
 0x143   : > { %5551 = vmatmul.mubr.msk.f32.gmra.mrb[92].mxu0 %vm1761_vm2, %v5466_v14  ;;  %v5864_v14 = vpack.c.bf16 %v2915_v2, %v2914_v62 }
 0x144   : > { %v5469_v22 = vpop.f32.mrb[38].mxu1  ;;  %v6789_v24 = vpop.f32.mrb[38].mxu0 }
 0x145   : > { %v1670_v26 = vpop.f32.mrb[39].mxu1  ;;  %v6791_v28 = vpop.f32.mrb[39].mxu0  ;;  %5865 = vmatprep.subr.bf16.mxu1 %v5864_v14 }
 0x146   : > { %5553 = vmatprep.mubr.msk.f32.mxu0 %vm1761_vm2, %v1670_v26  ;;  %5867 = vmatpush3.bf16.msra.mxu1 %v5864_v14 }
 0x147   : > { %5554 = vmatmul.mubr.msk.f32.gmra.mrb[94].mxu0 %vm1761_vm2, %v5469_v22 }
 0x148   : > { %v5472_v30 = vpop.f32.mrb[40].mxu1  ;;  %v6795_v32 = vpop.f32.mrb[40].mxu0 }
 0x149   : > { %v1680_v34 = vpop.f32.mrb[41].mxu1  ;;  %v6797_v36 = vpop.f32.mrb[41].mxu0 }
 0x14a   : > { %5556 = vmatprep.mubr.msk.f32.mxu0 %vm1761_vm2, %v1680_v34 }
 0x14b   : > { %5557 = vmatmul.mubr.msk.f32.gmra.mrb[96].mxu0 %vm1761_vm2, %v5472_v30 }
 0x14c   : > { %v5475_v38 = vpop.f32.mrb[42].mxu1  ;;  %v6801_v40 = vpop.f32.mrb[42].mxu0 }
 0x14d   : > { %v1690_v42 = vpop.f32.mrb[43].mxu1  ;;  %v6803_v44 = vpop.f32.mrb[43].mxu0 }
 0x14e   : > { %5559 = vmatprep.mubr.msk.f32.mxu0 %vm1761_vm2, %v1690_v42 }
 0x14f   : > { %5560 = vmatmul.mubr.msk.f32.gmra.mrb[98].mxu0 %vm1761_vm2, %v5475_v38 }
 0x150   : > { %v5478_v46 = vpop.f32.mrb[44].mxu1  ;;  %v6807_v48 = vpop.f32.mrb[44].mxu0 }
 0x151   : > { %v1700_v50 = vpop.f32.mrb[45].mxu1  ;;  %v6809_v52 = vpop.f32.mrb[45].mxu0 }
 0x152   : > { %5562 = vmatprep.mubr.msk.f32.mxu0 %vm1761_vm2, %v1700_v50 }
 0x153   : > { %5563 = vmatmul.mubr.msk.f32.gmra.mrb[100].mxu0 %vm1761_vm2, %v5478_v46 }
 0x154   : > { %v5481_v54 = vpop.f32.mrb[46].mxu1  ;;  %v6813_v56 = vpop.f32.mrb[46].mxu0 }
 0x155   : > { %v1710_v58 = vpop.f32.mrb[47].mxu1  ;;  %v6815_v60 = vpop.f32.mrb[47].mxu0 }
 0x156   : > { %5565 = vmatprep.mubr.msk.f32.mxu0 %vm1761_vm2, %v1710_v58 }
 0x157   : > { %5566 = vmatmul.mubr.msk.f32.gmra.mrb[102].mxu0 %vm1761_vm2, %v5481_v54 }
 0x158   : > { %v5484_v6 = vpop.f32.mrb[48].mxu1  ;;  %v6825_v10 = vpop.f32.mrb[48].mxu0 }
 0x159   : > { %v1720_v18 = vpop.f32.mrb[49].mxu1  ;;  %v6827_v22 = vpop.f32.mrb[49].mxu0 }
 0x15a   : > { %5568 = vmatprep.mubr.msk.f32.mxu0 %vm1761_vm2, %v1720_v18 }
 0x15b   : > { %5569 = vmatmul.mubr.msk.f32.gmra.mrb[104].mxu0 %vm1761_vm2, %v5484_v6 }
 0x15c   : > { %v5487_v26 = vpop.f32.mrb[50].mxu1  ;;  %v6831_v30 = vpop.f32.mrb[50].mxu0 }
 0x15d   : > { %v1730_v34 = vpop.f32.mrb[51].mxu1  ;;  %v6833_v38 = vpop.f32.mrb[51].mxu0 }
 0x15e   : > { %5571 = vmatprep.mubr.msk.f32.mxu0 %vm1761_vm2, %v1730_v34 }
 0x15f   : > { %5572 = vmatmul.mubr.msk.f32.gmra.mrb[106].mxu0 %vm1761_vm2, %v5487_v26 }
 0x160   : > { %v5490_v42 = vpop.f32.mrb[52].mxu1  ;;  %v6837_v46 = vpop.f32.mrb[52].mxu0 }
 0x161   : > { %v1740_v50 = vpop.f32.mrb[53].mxu1  ;;  %v6839_v54 = vpop.f32.mrb[53].mxu0 }
 0x162   : > { %5574 = vmatprep.mubr.msk.f32.mxu0 %vm1761_vm2, %v1740_v50 }
 0x163   : > { %5575 = vmatmul.mubr.msk.f32.gmra.mrb[108].mxu0 %vm1761_vm2, %v5490_v42 }
 0x164   : > { %v5493_v58 = vpop.f32.mrb[54].mxu1  ;;  %v6843_v62 = vpop.f32.mrb[54].mxu0 }
 0x165   : > { %v1750_v2 = vpop.f32.mrb[55].mxu1  ;;  %v1181_v6 = vpop.f32.mrb[55].mxu0 }
 0x166   : > { %5577 = vmatprep.mubr.msk.f32.mxu0 %vm1761_vm2, %v1750_v2 }
 0x167   : > { %5578 = vmatmul.mubr.msk.f32.gmra.mrb[110].mxu0 %vm1761_vm2, %v5493_v58 }
 0x168   : > { %5582 = vmatprep.mubr.msk.f32.mxu0 %vm1761_vm2, %v6676_v1  ;;  %v2917_v1 = vld [vmem:[%s7556_s8 + $0x18] sm:$0xff] }
 0x16b   : > { %5583 = vmatmul.mubr.msk.f32.vlgmr.msra.gmra.mrb[56].mxu0 %vm1761_vm2, %v6674_v63  ;;  %v2916_v63 = vld [vmem:[%s7556_s8 + $0x10] sm:$0xff] }
 0x16c   : > { %5585 = vmatprep.mubr.msk.f32.mxu0 %vm1761_vm2, %v6683_v5  ;;  %v6089_v5 = vmov 1  }
 0x16d   : > { %6056 = vset.pattern.permute.xlu1 %v6089_v5  ;;  %6055 = vset.pattern.permute.xlu0 %v6089_v5 }
 0x16f   : > { %5586 = vmatmul.mubr.msk.f32.gmra.mrb[58].mxu0 %vm1761_vm2, %v6681_v3  ;;  %v5868_v3 = vpack.c.bf16 %v2917_v1, %v2916_v63 }
 0x170   : > { %5588 = vmatprep.mubr.msk.f32.mxu0 %vm1761_vm2, %v6689_v9  ;;  %v615_v9 = vld [vmem:[%s595_s18 + $0x10] sm:$0xff] }
 0x171   : > { %5869 = vmatprep.subr.bf16.mxu1 %v5868_v3  ;;  %3507 = vperm.xlu0 %6055, %v615_v9  }
 0x172   : > { %5871 = vmatpush3.bf16.msra.mxu1 %v5868_v3 }
 0x173   : > { %5589 = vmatmul.mubr.msk.f32.gmra.mrb[60].mxu0 %vm1761_vm2, %v6687_v7  ;;  %v613_v7 = vld [vmem:[%s595_s18] sm:$0xff] }
 0x174   : > { %5591 = vmatprep.mubr.msk.f32.mxu0 %vm1761_vm2, %v6695_v13  ;;  %3497 = vperm.xlu1 %6056, %v613_v7   ;;  %v616_v13 = vld [vmem:[%s595_s18 + $0x18] sm:$0xff] }
 0x175   : > { %3512 = vperm.xlu0 %6055, %v616_v13  }
 0x177   : > { %5592 = vmatmul.mubr.msk.f32.gmra.mrb[62].mxu0 %vm1761_vm2, %v6693_v11  ;;  %v614_v11 = vld [vmem:[%s595_s18 + $0x8] sm:$0xff] }
 0x178   : > { %5594 = vmatprep.mubr.msk.f32.mxu0 %vm1761_vm2, %v6701_v17  ;;  %3502 = vperm.xlu1 %6056, %v614_v11   ;;  %v617_v17 = vld [vmem:[%s595_s18 + $0x20] sm:$0xff] }
 0x179   : > { %3517 = vperm.xlu0 %6055, %v617_v17  }
 0x17b   : > { %5595 = vmatmul.mubr.msk.f32.gmra.mrb[64].mxu0 %vm1761_vm2, %v6699_v15  ;;  %v618_v15 = vld [vmem:[%s595_s18 + $0x28] sm:$0xff] }
 0x17c   : > { %5597 = vmatprep.mubr.msk.f32.mxu0 %vm1761_vm2, %v6707_v21  ;;  %3522 = vperm.xlu1 %6056, %v618_v15   ;;  %v6971_v21 = vld [vmem:[%s7555_s7] ss:$0 sm:$0xff] }
 0x17f   : > { %5598 = vmatmul.mubr.msk.f32.gmra.mrb[66].mxu0 %vm1761_vm2, %v6705_v19  ;;  %v619_v19 = vld [vmem:[%s595_s18 + $0x30] sm:$0xff] }
 0x180   : > { %5600 = vmatprep.mubr.msk.f32.mxu0 %vm1761_vm2, %v6713_v25  ;;  %3527 = vperm.xlu0 %6055, %v619_v19  }
 0x183   : > { %5601 = vmatmul.mubr.msk.f32.gmra.mrb[68].mxu0 %vm1761_vm2, %v6711_v23 }
 0x184   : > { %5603 = vmatprep.mubr.msk.f32.mxu0 %vm1761_vm2, %v6719_v29 }
 0x187   : > { %5604 = vmatmul.mubr.msk.f32.gmra.mrb[70].mxu0 %vm1761_vm2, %v6717_v27 }
 0x188   : > { %5606 = vmatprep.mubr.msk.f32.mxu0 %vm1761_vm2, %v6725_v33 }
 0x18b   : > { %5607 = vmatmul.mubr.msk.f32.gmra.mrb[72].mxu0 %vm1761_vm2, %v6723_v31 }
 0x18c   : > { %5609 = vmatprep.mubr.msk.f32.mxu0 %vm1761_vm2, %v6731_v37 }
 0x18f   : > { %5610 = vmatmul.mubr.msk.f32.gmra.mrb[74].mxu0 %vm1761_vm2, %v6729_v35 }
 0x190   : > { %5612 = vmatprep.mubr.msk.f32.mxu0 %vm1761_vm2, %v6737_v41 }
 0x193   : > { %5613 = vmatmul.mubr.msk.f32.gmra.mrb[76].mxu0 %vm1761_vm2, %v6735_v39 }
 0x194   : > { %5615 = vmatprep.mubr.msk.f32.mxu0 %vm1761_vm2, %v6743_v45 }
 0x197   : > { %5616 = vmatmul.mubr.msk.f32.gmra.mrb[78].mxu0 %vm1761_vm2, %v6741_v43 }
 0x198   : > { %5618 = vmatprep.mubr.msk.f32.mxu0 %vm1761_vm2, %v6749_v49 }
 0x19b   : > { %5619 = vmatmul.mubr.msk.f32.gmra.mrb[80].mxu0 %vm1761_vm2, %v6747_v47 }
 0x19c   : > { %5621 = vmatprep.mubr.msk.f32.mxu0 %vm1761_vm2, %v6755_v53 }
 0x19f   : > { %5622 = vmatmul.mubr.msk.f32.gmra.mrb[82].mxu0 %vm1761_vm2, %v6753_v51 }
 0x1a0   : > { %5624 = vmatprep.mubr.msk.f32.mxu0 %vm1761_vm2, %v6761_v57 }
 0x1a3   : > { %5625 = vmatmul.mubr.msk.f32.gmra.mrb[84].mxu0 %vm1761_vm2, %v6759_v55 }
 0x1a4   : > { %5627 = vmatprep.mubr.msk.f32.mxu0 %vm1761_vm2, %v6767_v61 }
 0x1a7   : > { %5628 = vmatmul.mubr.msk.f32.gmra.mrb[86].mxu0 %vm1761_vm2, %v6765_v59 }
 0x1a8   : > { %5630 = vmatprep.mubr.msk.f32.mxu0 %vm1761_vm2, %v6773_v4 }
 0x1ab   : > { %5631 = vmatmul.mubr.msk.f32.gmra.mrb[88].mxu0 %vm1761_vm2, %v6771_v0 }
 0x1ac   : > { %5633 = vmatprep.mubr.msk.f32.mxu0 %vm1761_vm2, %v6779_v12 }
 0x1af   : > { %5634 = vmatmul.mubr.msk.f32.gmra.mrb[90].mxu0 %vm1761_vm2, %v6777_v8 }
 0x1b0   : > { %5636 = vmatprep.mubr.msk.f32.mxu0 %vm1761_vm2, %v6785_v20 }
 0x1b3   : > { %5637 = vmatmul.mubr.msk.f32.gmra.mrb[92].mxu0 %vm1761_vm2, %v6783_v16 }
 0x1b4   : > { %5639 = vmatprep.mubr.msk.f32.mxu0 %vm1761_vm2, %v6791_v28 }
 0x1b7   : > { %5640 = vmatmul.mubr.msk.f32.gmra.mrb[94].mxu0 %vm1761_vm2, %v6789_v24 }
 0x1b8   : > { %5642 = vmatprep.mubr.msk.f32.mxu0 %vm1761_vm2, %v6797_v36 }
 0x1bb   : > { %5643 = vmatmul.mubr.msk.f32.gmra.mrb[96].mxu0 %vm1761_vm2, %v6795_v32 }
 0x1bc   : > { %5645 = vmatprep.mubr.msk.f32.mxu0 %vm1761_vm2, %v6803_v44 }
 0x1bf   : > { %5646 = vmatmul.mubr.msk.f32.gmra.mrb[98].mxu0 %vm1761_vm2, %v6801_v40 }
 0x1c0   : > { %5648 = vmatprep.mubr.msk.f32.mxu0 %vm1761_vm2, %v6809_v52 }
 0x1c3   : > { %5649 = vmatmul.mubr.msk.f32.gmra.mrb[100].mxu0 %vm1761_vm2, %v6807_v48 }
 0x1c4   : > { %5651 = vmatprep.mubr.msk.f32.mxu0 %vm1761_vm2, %v6815_v60 }
 0x1c7   : > { %5652 = vmatmul.mubr.msk.f32.gmra.mrb[102].mxu0 %vm1761_vm2, %v6813_v56 }
 0x1c8   : > { %5654 = vmatprep.mubr.msk.f32.mxu0 %vm1761_vm2, %v6827_v22 }
 0x1cb   : > { %5655 = vmatmul.mubr.msk.f32.gmra.mrb[104].mxu0 %vm1761_vm2, %v6825_v10 }
 0x1cc   : > { %5657 = vmatprep.mubr.msk.f32.mxu0 %vm1761_vm2, %v6833_v38 }
 0x1cf   : > { %5658 = vmatmul.mubr.msk.f32.gmra.mrb[106].mxu0 %vm1761_vm2, %v6831_v30 }
 0x1d0   : > { %5660 = vmatprep.mubr.msk.f32.mxu0 %vm1761_vm2, %v6839_v54 }
 0x1d3   : > { %5661 = vmatmul.mubr.msk.f32.gmra.mrb[108].mxu0 %vm1761_vm2, %v6837_v46 }
 0x1d4   : > { %5663 = vmatprep.mubr.msk.f32.mxu0 %vm1761_vm2, %v1181_v6 }
 0x1d7   : > { %5664 = vmatmul.mubr.msk.f32.gmra.mrb[110].mxu0 %vm1761_vm2, %v6843_v62 }
 0x23e   : > { %v5584_v23 = vpop.f32.mrb[56].mxu0 }
 0x23f   : > { %v2803_v25 = vadd.f32 %v5584_v23, %v6971_v21  ;;  %v2516_v27 = vpop.f32.mrb[57].mxu0 }
 0x240   : > { %v2802_v29 = vadd.f32 %v6971_v21, %v2516_v27 }
 0x241   : > { %v2859_v35 = vmax.f32 %v2803_v25, 0.0 }
 0x242   : > { %v2858_v31 = vmax.f32 %v2802_v29, 0.0  ;;  %v5587_v33 = vpop.f32.mrb[58].mxu0 }
 0x243   : > { %v2805_v37 = vadd.f32 %v5587_v33, %v6971_v21  ;;  %v2526_v39 = vpop.f32.mrb[59].mxu0 }
 0x244   : > { %v2804_v41 = vadd.f32 %v6971_v21, %v2526_v39  ;;  %5674 = vmatprep.mubr.msk.f32.mxu1 %vm2925_vm3, %v2858_v31 }
 0x245   : > { %5675 = vmatmul.mubr.msk.f32.vlgmr.msra.gmra.mrb[56].mxu1 %vm2925_vm3, %v2859_v35  ;;  %v2861_v47 = vmax.f32 %v2805_v37, 0.0 }
 0x246   : > { %v2860_v43 = vmax.f32 %v2804_v41, 0.0  ;;  %v5590_v45 = vpop.f32.mrb[60].mxu0 }
 0x247   : > { %v2807_v49 = vadd.f32 %v5590_v45, %v6971_v21  ;;  %v2536_v51 = vpop.f32.mrb[61].mxu0 }
 0x248   : > { %v2806_v53 = vadd.f32 %v6971_v21, %v2536_v51  ;;  %5677 = vmatprep.mubr.msk.f32.mxu1 %vm2925_vm3, %v2860_v43 }
 0x249   : > { %5678 = vmatmul.mubr.msk.f32.gmra.mrb[58].mxu1 %vm2925_vm3, %v2861_v47  ;;  %v2863_v59 = vmax.f32 %v2807_v49, 0.0 }
 0x24a   : > { %v2862_v55 = vmax.f32 %v2806_v53, 0.0  ;;  %v5593_v57 = vpop.f32.mrb[62].mxu0 }
 0x24b   : > { %v2809_v61 = vadd.f32 %v5593_v57, %v6971_v21  ;;  %v2546_v0 = vpop.f32.mrb[63].mxu0 }
 0x24c   : > { %v2808_v4 = vadd.f32 %v6971_v21, %v2546_v0  ;;  %5680 = vmatprep.mubr.msk.f32.mxu1 %vm2925_vm3, %v2862_v55 }
 0x24d   : > { %5681 = vmatmul.mubr.msk.f32.gmra.mrb[60].mxu1 %vm2925_vm3, %v2863_v59  ;;  %v2865_v16 = vmax.f32 %v2809_v61, 0.0 }
 0x24e   : > { %v2864_v8 = vmax.f32 %v2808_v4, 0.0  ;;  %v5596_v12 = vpop.f32.mrb[64].mxu0 }
 0x24f   : > { %v2811_v20 = vadd.f32 %v5596_v12, %v6971_v21  ;;  %v2556_v24 = vpop.f32.mrb[65].mxu0 }
 0x250   : > { %v2810_v28 = vadd.f32 %v6971_v21, %v2556_v24  ;;  %5683 = vmatprep.mubr.msk.f32.mxu1 %vm2925_vm3, %v2864_v8 }
 0x251   : > { %5684 = vmatmul.mubr.msk.f32.gmra.mrb[62].mxu1 %vm2925_vm3, %v2865_v16  ;;  %v2867_v40 = vmax.f32 %v2811_v20, 0.0 }
 0x252   : > { %v2866_v32 = vmax.f32 %v2810_v28, 0.0  ;;  %v5599_v36 = vpop.f32.mrb[66].mxu0 }
 0x253   : > { %v2813_v44 = vadd.f32 %v5599_v36, %v6971_v21  ;;  %v2566_v48 = vpop.f32.mrb[67].mxu0 }
 0x254   : > { %v2812_v52 = vadd.f32 %v6971_v21, %v2566_v48  ;;  %5686 = vmatprep.mubr.msk.f32.mxu1 %vm2925_vm3, %v2866_v32 }
 0x255   : > { %5687 = vmatmul.mubr.msk.f32.gmra.mrb[64].mxu1 %vm2925_vm3, %v2867_v40  ;;  %v2869_v10 = vmax.f32 %v2813_v44, 0.0 }
 0x256   : > { %v2868_v56 = vmax.f32 %v2812_v52, 0.0  ;;  %v5602_v60 = vpop.f32.mrb[68].mxu0 }
 0x257   : > { %v2815_v14 = vadd.f32 %v5602_v60, %v6971_v21  ;;  %v2576_v18 = vpop.f32.mrb[69].mxu0 }
 0x258   : > { %v2814_v22 = vadd.f32 %v6971_v21, %v2576_v18  ;;  %5689 = vmatprep.mubr.msk.f32.mxu1 %vm2925_vm3, %v2868_v56 }
 0x259   : > { %5690 = vmatmul.mubr.msk.f32.gmra.mrb[66].mxu1 %vm2925_vm3, %v2869_v10  ;;  %v2871_v34 = vmax.f32 %v2815_v14, 0.0 }
 0x25a   : > { %v2870_v26 = vmax.f32 %v2814_v22, 0.0  ;;  %v5605_v30 = vpop.f32.mrb[70].mxu0 }
 0x25b   : > { %v2817_v38 = vadd.f32 %v5605_v30, %v6971_v21  ;;  %v2586_v42 = vpop.f32.mrb[71].mxu0 }
 0x25c   : > { %v2816_v46 = vadd.f32 %v6971_v21, %v2586_v42  ;;  %5692 = vmatprep.mubr.msk.f32.mxu1 %vm2925_vm3, %v2870_v26 }
 0x25d   : > { %5693 = vmatmul.mubr.msk.f32.gmra.mrb[68].mxu1 %vm2925_vm3, %v2871_v34  ;;  %v2873_v58 = vmax.f32 %v2817_v38, 0.0 }
 0x25e   : > { %v2872_v50 = vmax.f32 %v2816_v46, 0.0  ;;  %v5608_v54 = vpop.f32.mrb[72].mxu0 }
 0x25f   : > { %v2819_v62 = vadd.f32 %v5608_v54, %v6971_v21  ;;  %v2596_v2 = vpop.f32.mrb[73].mxu0 }
 0x260   : > { %v2818_v6 = vadd.f32 %v6971_v21, %v2596_v2  ;;  %5695 = vmatprep.mubr.msk.f32.mxu1 %vm2925_vm3, %v2872_v50 }
 0x261   : > { %5696 = vmatmul.mubr.msk.f32.gmra.mrb[70].mxu1 %vm2925_vm3, %v2873_v58  ;;  %v2875_v3 = vmax.f32 %v2819_v62, 0.0 }
 0x262   : > { %v2874_v63 = vmax.f32 %v2818_v6, 0.0  ;;  %v5611_v1 = vpop.f32.mrb[74].mxu0 }
 0x263   : > { %v2821_v5 = vadd.f32 %v5611_v1, %v6971_v21  ;;  %v2606_v7 = vpop.f32.mrb[75].mxu0 }
 0x264   : > { %v2820_v9 = vadd.f32 %v6971_v21, %v2606_v7  ;;  %5698 = vmatprep.mubr.msk.f32.mxu1 %vm2925_vm3, %v2874_v63 }
 0x265   : > { %5699 = vmatmul.mubr.msk.f32.gmra.mrb[72].mxu1 %vm2925_vm3, %v2875_v3  ;;  %v2877_v15 = vmax.f32 %v2821_v5, 0.0 }
 0x266   : > { %v2876_v11 = vmax.f32 %v2820_v9, 0.0  ;;  %v5614_v13 = vpop.f32.mrb[76].mxu0 }
 0x267   : > { %v2823_v17 = vadd.f32 %v5614_v13, %v6971_v21  ;;  %v2616_v19 = vpop.f32.mrb[77].mxu0 }
 0x268   : > { %v2822_v23 = vadd.f32 %v6971_v21, %v2616_v19  ;;  %5701 = vmatprep.mubr.msk.f32.mxu1 %vm2925_vm3, %v2876_v11 }
 0x269   : > { %5702 = vmatmul.mubr.msk.f32.gmra.mrb[74].mxu1 %vm2925_vm3, %v2877_v15  ;;  %v2879_v29 = vmax.f32 %v2823_v17, 0.0 }
 0x26a   : > { %v2878_v25 = vmax.f32 %v2822_v23, 0.0  ;;  %v5617_v27 = vpop.f32.mrb[78].mxu0 }
 0x26b   : > { %v2825_v31 = vadd.f32 %v5617_v27, %v6971_v21  ;;  %v2626_v33 = vpop.f32.mrb[79].mxu0 }
 0x26c   : > { %v2824_v35 = vadd.f32 %v6971_v21, %v2626_v33  ;;  %5704 = vmatprep.mubr.msk.f32.mxu1 %vm2925_vm3, %v2878_v25 }
 0x26d   : > { %5705 = vmatmul.mubr.msk.f32.gmra.mrb[76].mxu1 %vm2925_vm3, %v2879_v29  ;;  %v2881_v41 = vmax.f32 %v2825_v31, 0.0 }
 0x26e   : > { %v2880_v37 = vmax.f32 %v2824_v35, 0.0  ;;  %v5620_v39 = vpop.f32.mrb[80].mxu0 }
 0x26f   : > { %v2827_v43 = vadd.f32 %v5620_v39, %v6971_v21  ;;  %v2636_v45 = vpop.f32.mrb[81].mxu0 }
 0x270   : > { %v2826_v47 = vadd.f32 %v6971_v21, %v2636_v45  ;;  %5707 = vmatprep.mubr.msk.f32.mxu1 %vm2925_vm3, %v2880_v37 }
 0x271   : > { %5708 = vmatmul.mubr.msk.f32.gmra.mrb[78].mxu1 %vm2925_vm3, %v2881_v41  ;;  %v2883_v53 = vmax.f32 %v2827_v43, 0.0 }
 0x272   : > { %v2882_v49 = vmax.f32 %v2826_v47, 0.0  ;;  %v5623_v51 = vpop.f32.mrb[82].mxu0 }
 0x273   : > { %v2829_v55 = vadd.f32 %v5623_v51, %v6971_v21  ;;  %v2646_v57 = vpop.f32.mrb[83].mxu0 }
 0x274   : > { %v2828_v59 = vadd.f32 %v6971_v21, %v2646_v57  ;;  %5710 = vmatprep.mubr.msk.f32.mxu1 %vm2925_vm3, %v2882_v49 }
 0x275   : > { %5711 = vmatmul.mubr.msk.f32.gmra.mrb[80].mxu1 %vm2925_vm3, %v2883_v53  ;;  %v2885_v4 = vmax.f32 %v2829_v55, 0.0 }
 0x276   : > { %v2884_v61 = vmax.f32 %v2828_v59, 0.0  ;;  %v5626_v0 = vpop.f32.mrb[84].mxu0 }
 0x277   : > { %v2831_v8 = vadd.f32 %v5626_v0, %v6971_v21  ;;  %v2656_v12 = vpop.f32.mrb[85].mxu0 }
 0x278   : > { %v2830_v16 = vadd.f32 %v6971_v21, %v2656_v12  ;;  %5713 = vmatprep.mubr.msk.f32.mxu1 %vm2925_vm3, %v2884_v61 }
 0x279   : > { %5714 = vmatmul.mubr.msk.f32.gmra.mrb[82].mxu1 %vm2925_vm3, %v2885_v4  ;;  %v2887_v28 = vmax.f32 %v2831_v8, 0.0 }
 0x27a   : > { %v2886_v20 = vmax.f32 %v2830_v16, 0.0  ;;  %v5629_v24 = vpop.f32.mrb[86].mxu0 }
 0x27b   : > { %v2833_v32 = vadd.f32 %v5629_v24, %v6971_v21  ;;  %v2666_v36 = vpop.f32.mrb[87].mxu0 }
 0x27c   : > { %v2832_v40 = vadd.f32 %v6971_v21, %v2666_v36  ;;  %5716 = vmatprep.mubr.msk.f32.mxu1 %vm2925_vm3, %v2886_v20 }
 0x27d   : > { %5717 = vmatmul.mubr.msk.f32.gmra.mrb[84].mxu1 %vm2925_vm3, %v2887_v28  ;;  %v2889_v52 = vmax.f32 %v2833_v32, 0.0 }
 0x27e   : > { %v2888_v44 = vmax.f32 %v2832_v40, 0.0  ;;  %v5632_v48 = vpop.f32.mrb[88].mxu0 }
 0x27f   : > { %v2835_v56 = vadd.f32 %v5632_v48, %v6971_v21  ;;  %v2676_v60 = vpop.f32.mrb[89].mxu0 }
 0x280   : > { %v2834_v10 = vadd.f32 %v6971_v21, %v2676_v60  ;;  %5719 = vmatprep.mubr.msk.f32.mxu1 %vm2925_vm3, %v2888_v44 }
 0x281   : > { %5720 = vmatmul.mubr.msk.f32.gmra.mrb[86].mxu1 %vm2925_vm3, %v2889_v52  ;;  %v2891_v22 = vmax.f32 %v2835_v56, 0.0 }
 0x282   : > { %v2890_v14 = vmax.f32 %v2834_v10, 0.0  ;;  %v5635_v18 = vpop.f32.mrb[90].mxu0 }
 0x283   : > { %v2837_v26 = vadd.f32 %v5635_v18, %v6971_v21  ;;  %v2686_v30 = vpop.f32.mrb[91].mxu0 }
 0x284   : > { %v2836_v34 = vadd.f32 %v6971_v21, %v2686_v30  ;;  %5722 = vmatprep.mubr.msk.f32.mxu1 %vm2925_vm3, %v2890_v14 }
 0x285   : > { %5723 = vmatmul.mubr.msk.f32.gmra.mrb[88].mxu1 %vm2925_vm3, %v2891_v22  ;;  %v2893_v46 = vmax.f32 %v2837_v26, 0.0 }
 0x286   : > { %v2892_v38 = vmax.f32 %v2836_v34, 0.0  ;;  %v5638_v42 = vpop.f32.mrb[92].mxu0  ;;  %v3587_v34 = vld [vmem:[%s7552_s4 + $0x8] sm:$0xff] }
 0x287   : > { %v2839_v50 = vadd.f32 %v5638_v42, %v6971_v21  ;;  %v2696_v54 = vpop.f32.mrb[93].mxu0  ;;  %v7090_v42 = vpop.permute.xlu0 %3507 }
 0x288   : > { %v2838_v58 = vadd.f32 %v6971_v21, %v2696_v54  ;;  %5725 = vmatprep.mubr.msk.f32.mxu1 %vm2925_vm3, %v2892_v38  ;;  %v7088_v38 = vpop.permute.xlu1 %3497 }
 0x289   : > { %5726 = vmatmul.mubr.msk.f32.gmra.mrb[90].mxu1 %vm2925_vm3, %v2893_v46  ;;  %v2895_v6 = vmax.f32 %v2839_v50, 0.0 }
 0x28a   : > { %v2894_v62 = vmax.f32 %v2838_v58, 0.0  ;;  %v5641_v2 = vpop.f32.mrb[94].mxu0 }
 0x28b   : > { %v2841_v63 = vadd.f32 %v5641_v2, %v6971_v21  ;;  %v2706_v1 = vpop.f32.mrb[95].mxu0 }
 0x28c   : > { %v2840_v3 = vadd.f32 %v6971_v21, %v2706_v1  ;;  %5728 = vmatprep.mubr.msk.f32.mxu1 %vm2925_vm3, %v2894_v62  ;;  %v7099_v62 = vpop.permute.xlu1 %3502 }
 0x28d   : > { %5729 = vmatmul.mubr.msk.f32.gmra.mrb[92].mxu1 %vm2925_vm3, %v2895_v6  ;;  %v2897_v9 = vmax.f32 %v2841_v63, 0.0  ;;  %v7101_v6 = vpop.permute.xlu0 %3512 }
 0x28e   : > { %v2896_v5 = vmax.f32 %v2840_v3, 0.0  ;;  %v5644_v7 = vpop.f32.mrb[96].mxu0 }
 0x28f   : > { %v2843_v11 = vadd.f32 %v5644_v7, %v6971_v21  ;;  %v2716_v13 = vpop.f32.mrb[97].mxu0 }
 0x290   : > { %v2842_v15 = vadd.f32 %v6971_v21, %v2716_v13  ;;  %5731 = vmatprep.mubr.msk.f32.mxu1 %vm2925_vm3, %v2896_v5 }
 0x291   : > { %5732 = vmatmul.mubr.msk.f32.gmra.mrb[94].mxu1 %vm2925_vm3, %v2897_v9  ;;  %v2899_v23 = vmax.f32 %v2843_v11, 0.0 }
 0x292   : > { %v2898_v17 = vmax.f32 %v2842_v15, 0.0  ;;  %v5647_v19 = vpop.f32.mrb[98].mxu0 }
 0x293   : > { %v2845_v25 = vadd.f32 %v5647_v19, %v6971_v21  ;;  %v2726_v27 = vpop.f32.mrb[99].mxu0 }
 0x294   : > { %v2844_v29 = vadd.f32 %v6971_v21, %v2726_v27  ;;  %5734 = vmatprep.mubr.msk.f32.mxu1 %vm2925_vm3, %v2898_v17  ;;  %v7114_v27 = vpop.permute.xlu0 %3517 }
 0x295   : > { %5735 = vmatmul.mubr.msk.f32.gmra.mrb[96].mxu1 %vm2925_vm3, %v2899_v23  ;;  %v2901_v35 = vmax.f32 %v2845_v25, 0.0 }
 0x296   : > { %v2900_v31 = vmax.f32 %v2844_v29, 0.0  ;;  %v5650_v33 = vpop.f32.mrb[100].mxu0 }
 0x297   : > { %v2847_v37 = vadd.f32 %v5650_v33, %v6971_v21  ;;  %v2736_v39 = vpop.f32.mrb[101].mxu0 }
 0x298   : > { %v2846_v41 = vadd.f32 %v6971_v21, %v2736_v39  ;;  %5737 = vmatprep.mubr.msk.f32.mxu1 %vm2925_vm3, %v2900_v31 }
 0x299   : > { %5738 = vmatmul.mubr.msk.f32.gmra.mrb[98].mxu1 %vm2925_vm3, %v2901_v35  ;;  %v2903_v47 = vmax.f32 %v2847_v37, 0.0  ;;  %v7123_v35 = vpop.permute.xlu1 %3522 }
 0x29a   : > { %v2902_v43 = vmax.f32 %v2846_v41, 0.0  ;;  %v5653_v45 = vpop.f32.mrb[102].mxu0 }
 0x29b   : > { %v2849_v49 = vadd.f32 %v5653_v45, %v6971_v21  ;;  %v2746_v51 = vpop.f32.mrb[103].mxu0 }
 0x29c   : > { %v2848_v53 = vadd.f32 %v6971_v21, %v2746_v51  ;;  %5740 = vmatprep.mubr.msk.f32.mxu1 %vm2925_vm3, %v2902_v43 }
 0x29d   : > { %5741 = vmatmul.mubr.msk.f32.gmra.mrb[100].mxu1 %vm2925_vm3, %v2903_v47  ;;  %v2905_v59 = vmax.f32 %v2849_v49, 0.0 }
 0x29e   : > { %v2904_v55 = vmax.f32 %v2848_v53, 0.0  ;;  %v5656_v57 = vpop.f32.mrb[104].mxu0 }
 0x29f   : > { %v2851_v61 = vadd.f32 %v5656_v57, %v6971_v21  ;;  %v2756_v0 = vpop.f32.mrb[105].mxu0  ;;  %v7135_v57 = vpop.permute.xlu0 %3527 }
 0x2a0   : > { %v2850_v4 = vadd.f32 %v6971_v21, %v2756_v0  ;;  %5743 = vmatprep.mubr.msk.f32.mxu1 %vm2925_vm3, %v2904_v55 }
 0x2a1   : > { %5744 = vmatmul.mubr.msk.f32.gmra.mrb[102].mxu1 %vm2925_vm3, %v2905_v59  ;;  %v2907_v16 = vmax.f32 %v2851_v61, 0.0 }
 0x2a2   : > { %v2906_v8 = vmax.f32 %v2850_v4, 0.0  ;;  %v5659_v12 = vpop.f32.mrb[106].mxu0 }
 0x2a3   : > { %v2853_v20 = vadd.f32 %v5659_v12, %v6971_v21  ;;  %v2766_v24 = vpop.f32.mrb[107].mxu0 }
 0x2a4   : > { %v2852_v28 = vadd.f32 %v6971_v21, %v2766_v24  ;;  %5746 = vmatprep.mubr.msk.f32.mxu1 %vm2925_vm3, %v2906_v8 }
 0x2a5   : > { %5747 = vmatmul.mubr.msk.f32.gmra.mrb[104].mxu1 %vm2925_vm3, %v2907_v16  ;;  %v2909_v40 = vmax.f32 %v2853_v20, 0.0 }
 0x2a6   : > { %v2908_v32 = vmax.f32 %v2852_v28, 0.0  ;;  %v5662_v36 = vpop.f32.mrb[108].mxu0 }
 0x2a7   : > { %v2855_v44 = vadd.f32 %v5662_v36, %v6971_v21  ;;  %v2776_v48 = vpop.f32.mrb[109].mxu0 }
 0x2a8   : > { %v2854_v52 = vadd.f32 %v6971_v21, %v2776_v48  ;;  %5749 = vmatprep.mubr.msk.f32.mxu1 %vm2925_vm3, %v2908_v32 }
 0x2a9   : > { %5750 = vmatmul.mubr.msk.f32.gmra.mrb[106].mxu1 %vm2925_vm3, %v2909_v40  ;;  %v2911_v10 = vmax.f32 %v2855_v44, 0.0 }
 0x2aa   : > { %v2910_v56 = vmax.f32 %v2854_v52, 0.0  ;;  %v5665_v60 = vpop.f32.mrb[110].mxu0 }
 0x2ab   : > { %v2857_v14 = vadd.f32 %v5665_v60, %v6971_v21  ;;  %v2786_v18 = vpop.f32.mrb[111].mxu0 }
 0x2ac   : > { %v2856_v22 = vadd.f32 %v6971_v21, %v2786_v18  ;;  %5752 = vmatprep.mubr.msk.f32.mxu1 %vm2925_vm3, %v2910_v56  ;;  %v7095_v21 = vld [vmem:[%s7557_s9] ss:$0 sm:$0xff] }
 0x2ad   : > { %5753 = vmatmul.mubr.msk.f32.gmra.mrb[108].mxu1 %vm2925_vm3, %v2911_v10  ;;  %v2913_v30 = vmax.f32 %v2857_v14, 0.0 }
 0x2ae   : > { %v2912_v26 = vmax.f32 %v2856_v22, 0.0 }
 0x2b0   : > { %5755 = vmatprep.mubr.msk.f32.mxu1 %vm2925_vm3, %v2912_v26 }
 0x2b1   : > { %5756 = vmatmul.mubr.msk.f32.gmra.mrb[110].mxu1 %vm2925_vm3, %v2913_v30 }
 0x2b2   : > { %3706 = vmatprep.mubr.f32.mxu1 %v3587_v34 }
 0x318   : > { %v5676_v46 = vpop.f32.mrb[56].mxu1 }
 0x319   : > { %v3166_v50 = vadd.f32 %v5676_v46, %v7095_v21  ;;  %v3160_v54 = vpop.f32.mrb[57].mxu1 }
 0x31a   : > { %v3161_v58 = vadd.f32 %v7095_v21, %v3160_v54 }
 0x31b   : > { %v3440_v2 = vmax.f32 %v3166_v50, 0.0 }
 0x31c   : > { %v3439_v63 = vmax.f32 %v3161_v58, 0.0  ;;  %v5679_v1 = vpop.f32.mrb[58].mxu1 }
 0x31d   : > { %v3176_v3 = vadd.f32 %v5679_v1, %v7095_v21  ;;  %v3170_v5 = vpop.f32.mrb[59].mxu1  ;;  %v7105_v7 = vmul.f32 %v7099_v62, %v3440_v2 }
 0x31e   : > { %v7108_v9 = vmul.f32 %v7088_v38, %v3439_v63  ;;  %v3171_v11 = vadd.f32 %v7095_v21, %v3170_v5 }
 0x31f   : > { %v3442_v13 = vmax.f32 %v3176_v3, 0.0 }
 0x320   : > { %v3441_v15 = vmax.f32 %v3171_v11, 0.0  ;;  %v5682_v17 = vpop.f32.mrb[60].mxu1  ;;  %v5874_v19 = vpack.c.bf16 %v7105_v7, %v7108_v9 }
 0x321   : > { %v3186_v23 = vadd.f32 %v5682_v17, %v7095_v21  ;;  %v3180_v25 = vpop.f32.mrb[61].mxu1  ;;  %v7117_v29 = vmul.f32 %v7101_v6, %v3442_v13 }
 0x322   : > { %v7120_v31 = vmul.f32 %v7090_v42, %v3441_v15  ;;  %v3181_v33 = vadd.f32 %v7095_v21, %v3180_v25 }
 0x323   : > { %v3444_v37 = vmax.f32 %v3186_v23, 0.0 }
 0x324   : > { %v3443_v39 = vmax.f32 %v3181_v33, 0.0  ;;  %v5685_v41 = vpop.f32.mrb[62].mxu1  ;;  %v5878_v43 = vpack.c.bf16 %v7117_v29, %v7120_v31 }
 0x325   : > { %v3196_v45 = vadd.f32 %v5685_v41, %v7095_v21  ;;  %v3190_v47 = vpop.f32.mrb[63].mxu1  ;;  %v7129_v49 = vmul.f32 %v7123_v35, %v3444_v37 }
 0x326   : > { %v3191_v51 = vadd.f32 %v7095_v21, %v3190_v47  ;;  %v7133_v53 = vmul.f32 %v7114_v27, %v3443_v39 }
 0x327   : > { %v3446_v55 = vmax.f32 %v3196_v45, 0.0 }
 0x328   : > { %v3445_v59 = vmax.f32 %v3191_v51, 0.0  ;;  %v5688_v61 = vpop.f32.mrb[64].mxu1  ;;  %v5882_v0 = vpack.c.bf16 %v7129_v49, %v7133_v53 }
 0x329   : > { %v7140_v4 = vmul.f32 %v7088_v38, %v3446_v55  ;;  %v3206_v8 = vadd.f32 %v5688_v61, %v7095_v21  ;;  %v3200_v12 = vpop.f32.mrb[65].mxu1 }
 0x32a   : > { %v3201_v16 = vadd.f32 %v7095_v21, %v3200_v12  ;;  %v7145_v20 = vmul.f32 %v7135_v57, %v3445_v59 }
 0x32b   : > { %v3448_v24 = vmax.f32 %v3206_v8, 0.0 }
 0x32c   : > { %v3447_v28 = vmax.f32 %v3201_v16, 0.0  ;;  %v5691_v32 = vpop.f32.mrb[66].mxu1  ;;  %v5886_v36 = vpack.c.bf16 %v7140_v4, %v7145_v20 }
 0x32d   : > { %v7150_v40 = vmul.f32 %v7090_v42, %v3448_v24  ;;  %v3216_v44 = vadd.f32 %v5691_v32, %v7095_v21  ;;  %v3210_v48 = vpop.f32.mrb[67].mxu1 }
 0x32e   : > { %v7154_v52 = vmul.f32 %v7099_v62, %v3447_v28  ;;  %v3211_v56 = vadd.f32 %v7095_v21, %v3210_v48 }
 0x32f   : > { %v3450_v60 = vmax.f32 %v3216_v44, 0.0 }
 0x330   : > { %v5890_v10 = vpack.c.bf16 %v7150_v40, %v7154_v52  ;;  %v3449_v14 = vmax.f32 %v3211_v56, 0.0  ;;  %v5694_v18 = vpop.f32.mrb[68].mxu1 }
 0x331   : > { %v7160_v22 = vmul.f32 %v7114_v27, %v3450_v60  ;;  %v3226_v26 = vadd.f32 %v5694_v18, %v7095_v21  ;;  %v3220_v30 = vpop.f32.mrb[69].mxu1 }
 0x332   : > { %v7164_v34 = vmul.f32 %v7101_v6, %v3449_v14  ;;  %v3221_v46 = vadd.f32 %v7095_v21, %v3220_v30 }
 0x333   : > { %v3452_v50 = vmax.f32 %v3226_v26, 0.0 }
 0x334   : > { %v5894_v54 = vpack.c.bf16 %v7160_v22, %v7164_v34  ;;  %v3451_v58 = vmax.f32 %v3221_v46, 0.0  ;;  %v5697_v2 = vpop.f32.mrb[70].mxu1 }
 0x335   : > { %v7170_v63 = vmul.f32 %v7135_v57, %v3452_v50  ;;  %v3236_v1 = vadd.f32 %v5697_v2, %v7095_v21  ;;  %v3230_v3 = vpop.f32.mrb[71].mxu1 }
 0x336   : > { %v7174_v5 = vmul.f32 %v7123_v35, %v3451_v58  ;;  %v3231_v11 = vadd.f32 %v7095_v21, %v3230_v3 }
 0x337   : > { %v3454_v13 = vmax.f32 %v3236_v1, 0.0 }
 0x338   : > { %v5898_v15 = vpack.c.bf16 %v7170_v63, %v7174_v5  ;;  %v3453_v17 = vmax.f32 %v3231_v11, 0.0  ;;  %v5700_v23 = vpop.f32.mrb[72].mxu1  ;;  %v3586_v63 = vld [vmem:[%s7552_s4] sm:$0xff] }
 0x339   : > { %v7180_v25 = vmul.f32 %v7099_v62, %v3454_v13  ;;  %v3246_v33 = vadd.f32 %v5700_v23, %v7095_v21  ;;  %v3240_v37 = vpop.f32.mrb[73].mxu1 }
 0x33a   : > { %v7184_v39 = vmul.f32 %v7088_v38, %v3453_v17  ;;  %v3241_v41 = vadd.f32 %v7095_v21, %v3240_v37 }
 0x33b   : > { %v3456_v45 = vmax.f32 %v3246_v33, 0.0 }
 0x33c   : > { %v5902_v47 = vpack.c.bf16 %v7180_v25, %v7184_v39  ;;  %v3455_v51 = vmax.f32 %v3241_v41, 0.0  ;;  %v5703_v55 = vpop.f32.mrb[74].mxu1 }
 0x33d   : > { %v3547_v59 = vmul.f32 %v7101_v6, %v3456_v45  ;;  %v3256_v61 = vadd.f32 %v5703_v55, %v7095_v21  ;;  %v3250_v8 = vpop.f32.mrb[75].mxu1 }
 0x33e   : > { %v3546_v12 = vmul.f32 %v7090_v42, %v3455_v51  ;;  %v3251_v16 = vadd.f32 %v7095_v21, %v3250_v8 }
 0x33f   : > { %v3458_v24 = vmax.f32 %v3256_v61, 0.0 }
 0x340   : > { %v3457_v28 = vmax.f32 %v3251_v16, 0.0  ;;  %v5706_v32 = vpop.f32.mrb[76].mxu1  ;;  %v5872_v44 = vpack.c.bf16 %v3547_v59, %v3546_v12 }
 0x341   : > { %v3549_v48 = vmul.f32 %v7123_v35, %v3458_v24  ;;  %v3266_v56 = vadd.f32 %v5706_v32, %v7095_v21  ;;  %v3260_v60 = vpop.f32.mrb[77].mxu1 }
 0x342   : > { %v3548_v14 = vmul.f32 %v7114_v27, %v3457_v28  ;;  %v3261_v18 = vadd.f32 %v7095_v21, %v3260_v60  ;;  %5873 = vmatprep.subr.bf16.mxu1 %v5872_v44 }
 0x343   : > { %v3460_v26 = vmax.f32 %v3266_v56, 0.0  ;;  %5875 = vmatpush3.bf16.msra.mxu1 %v5874_v19 }
 0x344   : > { %v3459_v30 = vmax.f32 %v3261_v18, 0.0  ;;  %v5709_v46 = vpop.f32.mrb[78].mxu1  ;;  %v5876_v50 = vpack.c.bf16 %v3549_v48, %v3548_v14 }
 0x345   : > { %v3551_v58 = vmul.f32 %v7088_v38, %v3460_v26  ;;  %v3276_v2 = vadd.f32 %v5709_v46, %v7095_v21  ;;  %v3270_v1 = vpop.f32.mrb[79].mxu1 }
 0x346   : > { %v3550_v3 = vmul.f32 %v7135_v57, %v3459_v30  ;;  %v3271_v11 = vadd.f32 %v7095_v21, %v3270_v1  ;;  %5877 = vmatprep.subr.bf16.mxu1 %v5876_v50 }
 0x347   : > { %v3462_v13 = vmax.f32 %v3276_v2, 0.0  ;;  %5879 = vmatpush3.bf16.msra.mxu1 %v5878_v43 }
 0x348   : > { %v3461_v7 = vmax.f32 %v3271_v11, 0.0  ;;  %v5712_v9 = vpop.f32.mrb[80].mxu1  ;;  %v5880_v19 = vpack.c.bf16 %v3551_v58, %v3550_v3 }
 0x349   : > { %v3553_v17 = vmul.f32 %v7090_v42, %v3462_v13  ;;  %v3286_v23 = vadd.f32 %v5712_v9, %v7095_v21  ;;  %v3280_v33 = vpop.f32.mrb[81].mxu1 }
 0x34a   : > { %v3552_v37 = vmul.f32 %v7099_v62, %v3461_v7  ;;  %v3281_v41 = vadd.f32 %v7095_v21, %v3280_v33  ;;  %5881 = vmatprep.subr.bf16.mxu1 %v5880_v19  ;;  %v6090_v33 = vmov 0.0|0.0  }
 0x34b   : > { %v3464_v45 = vmax.f32 %v3286_v23, 0.0  ;;  %5883 = vmatpush3.bf16.msra.mxu1 %v5882_v0 }
 0x34c   : > { %v3463_v29 = vmax.f32 %v3281_v41, 0.0  ;;  %v5715_v31 = vpop.f32.mrb[82].mxu1  ;;  %v5884_v43 = vpack.c.bf16 %v3553_v17, %v3552_v37  ;;  %v3591_v37 = vld [vmem:[%s7552_s4 + $0x28] sm:$0xff] }
 0x34d   : > { %v3555_v51 = vmul.f32 %v7114_v27, %v3464_v45  ;;  %v3296_v55 = vadd.f32 %v5715_v31, %v7095_v21  ;;  %v3290_v59 = vpop.f32.mrb[83].mxu1  ;;  %v3590_v31 = vld [vmem:[%s7552_s4 + $0x20] sm:$0xff] }
 0x34e   : > { %v3554_v61 = vmul.f32 %v7101_v6, %v3463_v29  ;;  %v3291_v8 = vadd.f32 %v7095_v21, %v3290_v59  ;;  %5885 = vmatprep.subr.bf16.mxu1 %v5884_v43  ;;  %v3595_v59 = vld [vmem:[%s7552_s4 + $0x48] sm:$0xff] }
 0x34f   : > { %v3466_v12 = vmax.f32 %v3296_v55, 0.0  ;;  %5887 = vmatpush3.bf16.msra.mxu1 %v5886_v36 }
 0x350   : > { %v3465_v49 = vmax.f32 %v3291_v8, 0.0  ;;  %v5718_v53 = vpop.f32.mrb[84].mxu1  ;;  %v5888_v0 = vpack.c.bf16 %v3555_v51, %v3554_v61 }
 0x351   : > { %v3557_v16 = vmul.f32 %v7135_v57, %v3466_v12  ;;  %v3306_v24 = vadd.f32 %v5718_v53, %v7095_v21  ;;  %v3300_v28 = vpop.f32.mrb[85].mxu1 }
 0x352   : > { %v3556_v32 = vmul.f32 %v7123_v35, %v3465_v49  ;;  %v3301_v44 = vadd.f32 %v7095_v21, %v3300_v28  ;;  %5889 = vmatprep.subr.bf16.mxu1 %v5888_v0 }
 0x353   : > { %v3468_v48 = vmax.f32 %v3306_v24, 0.0  ;;  %5891 = vmatpush3.bf16.msra.mxu1 %v5890_v10 }
 0x354   : > { %v3467_v4 = vmax.f32 %v3301_v44, 0.0  ;;  %v5721_v20 = vpop.f32.mrb[86].mxu1  ;;  %v5892_v36 = vpack.c.bf16 %v3557_v16, %v3556_v32  ;;  %v3594_v16 = vld [vmem:[%s7552_s4 + $0x40] sm:$0xff]  ;;  %v3599_v44 = vld [vmem:[%s7552_s4 + $0x68] sm:$0xff] }
 0x355   : > { %v3559_v56 = vmul.f32 %v7099_v62, %v3468_v48  ;;  %v3316_v60 = vadd.f32 %v5721_v20, %v7095_v21  ;;  %v3310_v14 = vpop.f32.mrb[87].mxu1 }
 0x356   : > { %v3558_v18 = vmul.f32 %v7088_v38, %v3467_v4  ;;  %v3311_v26 = vadd.f32 %v7095_v21, %v3310_v14  ;;  %5893 = vmatprep.subr.bf16.mxu1 %v5892_v36  ;;  %v3598_v14 = vld [vmem:[%s7552_s4 + $0x60] sm:$0xff] }
 0x357   : > { %v3470_v30 = vmax.f32 %v3316_v60, 0.0  ;;  %5895 = vmatpush3.bf16.msra.mxu1 %v5894_v54 }
 0x358   : > { %v3469_v40 = vmax.f32 %v3311_v26, 0.0  ;;  %v5724_v52 = vpop.f32.mrb[88].mxu1  ;;  %v5896_v10 = vpack.c.bf16 %v3559_v56, %v3558_v18 }
 0x359   : > { %v3561_v46 = vmul.f32 %v7101_v6, %v3470_v30  ;;  %v3326_v50 = vadd.f32 %v5724_v52, %v7095_v21  ;;  %v3320_v58 = vpop.f32.mrb[89].mxu1 }
 0x35a   : > { %v3560_v2 = vmul.f32 %v7090_v42, %v3469_v40  ;;  %v3321_v1 = vadd.f32 %v7095_v21, %v3320_v58  ;;  %5897 = vmatprep.subr.bf16.mxu1 %v5896_v10  ;;  %v3603_v40 = vld [vmem:[%s7552_s4 + $0x88] sm:$0xff] }
 0x35b   : > { %v3472_v3 = vmax.f32 %v3326_v50, 0.0  ;;  %5899 = vmatpush3.bf16.msra.mxu1 %v5898_v15 }
 0x35c   : > { %v3471_v22 = vmax.f32 %v3321_v1, 0.0  ;;  %v5727_v34 = vpop.f32.mrb[90].mxu1  ;;  %v5900_v54 = vpack.c.bf16 %v3561_v46, %v3560_v2  ;;  %v3602_v1 = vld [vmem:[%s7552_s4 + $0x80] sm:$0xff] }
 0x35d   : > { %v3563_v11 = vmul.f32 %v7123_v35, %v3472_v3  ;;  %v3336_v13 = vadd.f32 %v5727_v34, %v7095_v21  ;;  %v3330_v7 = vpop.f32.mrb[91].mxu1 }
 0x35e   : > { %v3562_v9 = vmul.f32 %v7114_v27, %v3471_v22  ;;  %v3331_v19 = vadd.f32 %v7095_v21, %v3330_v7  ;;  %5901 = vmatprep.subr.bf16.mxu1 %v5900_v54  ;;  %v3607_v54 = vld [vmem:[%s7552_s4 + $0xa8] sm:$0xff] }
 0x35f   : > { %v3474_v17 = vmax.f32 %v3336_v13, 0.0  ;;  %5903 = vmatpush3.bf16.msra.mxu1 %v5902_v47 }
 0x360   : > { %v5905_v5 = vpack.c.bf16 %v3563_v11, %v3562_v9  ;;  %v3473_v15 = vmax.f32 %v3331_v19, 0.0  ;;  %v5730_v23 = vpop.f32.mrb[92].mxu1  ;;  %5904 = vmatprep.subr.bf16.mxu1 %v6090_v33 }
 0x361   : > { %v3565_v41 = vmul.f32 %v7088_v38, %v3474_v17  ;;  %v3346_v45 = vadd.f32 %v5730_v23, %v7095_v21  ;;  %v3340_v25 = vpop.f32.mrb[93].mxu1 }
 0x362   : > { %v3564_v39 = vmul.f32 %v7135_v57, %v3473_v15  ;;  %v3341_v47 = vadd.f32 %v7095_v21, %v3340_v25  ;;  %3707 = vmatmul.mubr.f32.vlgmr.msra.gmra.mrb[112].mxu1 %v3586_v63  ;;  %v3606_v63 = vld [vmem:[%s7552_s4 + $0xa0] sm:$0xff] }
 0x363   : > { %v3476_v29 = vmax.f32 %v3346_v45, 0.0  ;;  %5906 = vmatpush1.bf16.msra.mxu1 %v5905_v5  ;;  %3711 = vmatprep.mubr.f32.mxu1 %v3591_v37  ;;  %v3611_v37 = vld [vmem:[%s7552_s4 + $0xc8] sm:$0xff] }
 0x364   : > { %v5908_v43 = vpack.c.bf16 %v3565_v41, %v3564_v39  ;;  %v3475_v51 = vmax.f32 %v3341_v47, 0.0  ;;  %v5733_v55 = vpop.f32.mrb[94].mxu1  ;;  %5907 = vmatprep.subr.bf16.mxu1 %v6090_v33 }
 0x365   : > { %v3567_v61 = vmul.f32 %v7090_v42, %v3476_v29  ;;  %v3356_v8 = vadd.f32 %v5733_v55, %v7095_v21  ;;  %v3350_v12 = vpop.f32.mrb[95].mxu1 }
 0x366   : > { %v3566_v49 = vmul.f32 %v7099_v62, %v3475_v51  ;;  %v3351_v53 = vadd.f32 %v7095_v21, %v3350_v12  ;;  %3712 = vmatmul.mubr.f32.gmra.mrb[114].mxu1 %v3590_v31  ;;  %v3610_v31 = vld [vmem:[%s7552_s4 + $0xc0] sm:$0xff] }
 0x367   : > { %v3478_v0 = vmax.f32 %v3356_v8, 0.0  ;;  %5909 = vmatpush1.bf16.msra.mxu1 %v5908_v43  ;;  %3716 = vmatprep.mubr.f32.mxu1 %v3595_v59  ;;  %v3615_v59 = vld [vmem:[%s7552_s4 + $0xe8] sm:$0xff] }
 0x368   : > { %v5911_v24 = vpack.c.bf16 %v3567_v61, %v3566_v49  ;;  %v3477_v28 = vmax.f32 %v3351_v53, 0.0  ;;  %v5736_v32 = vpop.f32.mrb[96].mxu1  ;;  %5910 = vmatprep.subr.bf16.mxu1 %v6090_v33 }
 0x369   : > { %v3569_v48 = vmul.f32 %v7114_v27, %v3478_v0  ;;  %v3366_v4 = vadd.f32 %v5736_v32, %v7095_v21  ;;  %v3360_v20 = vpop.f32.mrb[97].mxu1 }
 0x36a   : > { %v3568_v36 = vmul.f32 %v7101_v6, %v3477_v28  ;;  %v3361_v56 = vadd.f32 %v7095_v21, %v3360_v20  ;;  %3717 = vmatmul.mubr.f32.gmra.mrb[116].mxu1 %v3594_v16  ;;  %v3614_v16 = vld [vmem:[%s7552_s4 + $0xe0] sm:$0xff] }
 0x36b   : > { %v3480_v60 = vmax.f32 %v3366_v4, 0.0  ;;  %5912 = vmatpush1.bf16.msra.mxu1 %v5911_v24  ;;  %3721 = vmatprep.mubr.f32.mxu1 %v3599_v44  ;;  %v3589_v44 = vld [vmem:[%s7552_s4 + $0x18] sm:$0xff] }
 0x36c   : > { %v5914_v18 = vpack.c.bf16 %v3569_v48, %v3568_v36  ;;  %v3479_v26 = vmax.f32 %v3361_v56, 0.0  ;;  %v5739_v30 = vpop.f32.mrb[98].mxu1  ;;  %5913 = vmatprep.subr.bf16.mxu1 %v6090_v33 }
 0x36d   : > { %v3571_v52 = vmul.f32 %v7135_v57, %v3480_v60  ;;  %v3376_v10 = vadd.f32 %v5739_v30, %v7095_v21  ;;  %v3370_v46 = vpop.f32.mrb[99].mxu1 }
 0x36e   : > { %v3570_v50 = vmul.f32 %v7123_v35, %v3479_v26  ;;  %v3371_v58 = vadd.f32 %v7095_v21, %v3370_v46  ;;  %3722 = vmatmul.mubr.f32.gmra.mrb[118].mxu1 %v3598_v14 }
 0x36f   : > { %v3482_v2 = vmax.f32 %v3376_v10, 0.0  ;;  %5915 = vmatpush1.bf16.msra.mxu1 %v5914_v18  ;;  %3726 = vmatprep.mubr.f32.mxu1 %v3603_v40 }
 0x370   : > { %v5917_v3 = vpack.c.bf16 %v3571_v52, %v3570_v50  ;;  %v3481_v22 = vmax.f32 %v3371_v58, 0.0  ;;  %v5742_v34 = vpop.f32.mrb[100].mxu1  ;;  %5916 = vmatprep.subr.bf16.mxu1 %v6090_v33 }
 0x371   : > { %v3573_v11 = vmul.f32 %v7099_v62, %v3482_v2  ;;  %v3386_v13 = vadd.f32 %v5742_v34, %v7095_v21  ;;  %v3380_v7 = vpop.f32.mrb[101].mxu1 }
 0x372   : > { %v3572_v9 = vmul.f32 %v7088_v38, %v3481_v22  ;;  %v3381_v19 = vadd.f32 %v7095_v21, %v3380_v7  ;;  %3727 = vmatmul.mubr.f32.gmra.mrb[120].mxu1 %v3602_v1 }
 0x373   : > { %v3484_v17 = vmax.f32 %v3386_v13, 0.0  ;;  %5918 = vmatpush1.bf16.msra.mxu1 %v5917_v3  ;;  %3731 = vmatprep.mubr.f32.mxu1 %v3607_v54 }
 0x374   : > { %v5920_v5 = vpack.c.bf16 %v3573_v11, %v3572_v9  ;;  %v3483_v15 = vmax.f32 %v3381_v19, 0.0  ;;  %v5745_v23 = vpop.f32.mrb[102].mxu1  ;;  %5919 = vmatprep.subr.bf16.mxu1 %v6090_v33  ;;  %v3600_v19 = vld [vmem:[%s7552_s4 + $0x70] sm:$0xff] }
 0x375   : > { %v3575_v41 = vmul.f32 %v7101_v6, %v3484_v17  ;;  %v3396_v45 = vadd.f32 %v5745_v23, %v7095_v21  ;;  %v3390_v25 = vpop.f32.mrb[103].mxu1  ;;  %v3605_v17 = vld [vmem:[%s7552_s4 + $0x98] sm:$0xff] }
 0x376   : > { %v3574_v39 = vmul.f32 %v7090_v42, %v3483_v15  ;;  %v3391_v47 = vadd.f32 %v7095_v21, %v3390_v25  ;;  %3732 = vmatmul.mubr.f32.gmra.mrb[122].mxu1 %v3606_v63  ;;  %v3604_v63 = vld [vmem:[%s7552_s4 + $0x90] sm:$0xff]  ;;  %v3613_v23 = vld [vmem:[%s7552_s4 + $0xd8] sm:$0xff]  ;;  %v3853_v25 = vld [vmem:[%s7559_s11] sm:$0xff] }
 0x377   : > { %v3486_v29 = vmax.f32 %v3396_v45, 0.0  ;;  %5921 = vmatpush1.bf16.msra.mxu1 %v5920_v5  ;;  %3736 = vmatprep.mubr.f32.mxu1 %v3611_v37  ;;  %v3609_v5 = vld [vmem:[%s7552_s4 + $0xb8] sm:$0xff]  ;;  %v3608_v15 = vld [vmem:[%s7552_s4 + $0xb0] sm:$0xff] }
 0x378   : > { %v5923_v43 = vpack.c.bf16 %v3575_v41, %v3574_v39  ;;  %v3485_v51 = vmax.f32 %v3391_v47, 0.0  ;;  %v5748_v55 = vpop.f32.mrb[104].mxu1  ;;  %5922 = vmatprep.subr.bf16.mxu1 %v6090_v33  ;;  %v3612_v37 = vld [vmem:[%s7552_s4 + $0xd0] sm:$0xff]  ;;  %v3617_v41 = vld [vmem:[%s7552_s4 + $0xf8] sm:$0xff]  ;;  %v3854_v39 = vld [vmem:[%s7559_s11 + $0x8] sm:$0xff] }
 0x379   : > { %v3577_v61 = vmul.f32 %v7123_v35, %v3486_v29  ;;  %v3406_v8 = vadd.f32 %v5748_v55, %v7095_v21  ;;  %v3400_v12 = vpop.f32.mrb[105].mxu1  ;;  %v3616_v45 = vld [vmem:[%s7552_s4 + $0xf0] sm:$0xff]  ;;  %v5940_v47 = vpack.c.bf16 %v3854_v39, %v3853_v25  ;;  %v4141_v55 = vld [vmem:[%s7561_s13] sm:$0xff]  ;;  %v7471_v39 = vld [vmem:[%s6211_s1 + $0x38] sm:$0xff] }
 0x37a   : > { %v3576_v49 = vmul.f32 %v7114_v27, %v3485_v51  ;;  %v3401_v53 = vadd.f32 %v7095_v21, %v3400_v12  ;;  %3737 = vmatmul.mubr.f32.gmra.mrb[124].mxu1 %v3610_v31  ;;  %v3855_v29 = vld [vmem:[%s7559_s11 + $0x10] sm:$0xff]  ;;  %v3856_v31 = vld [vmem:[%s7559_s11 + $0x18] sm:$0xff]  ;;  %v3852_v51 = vld [vmem:[%s7558_s10] sm:$0xf] }
 0x37b   : > { %v3488_v0 = vmax.f32 %v3406_v8, 0.0  ;;  %5924 = vmatpush1.bf16.msra.mxu1 %v5923_v43  ;;  %3741 = vmatprep.mubr.f32.mxu1 %v3615_v59  ;;  %v5944_v43 = vpack.c.bf16 %v3856_v31, %v3855_v29  ;;  %v4142_v59 = vld [vmem:[%s7561_s13 + $0x8] sm:$0xff]  ;;  %v7466_v25 = vld [vmem:[%s6211_s1 + $0x30] sm:$0xff]  ;;  %v4144_v29 = vld [vmem:[%s7561_s13 + $0x18] sm:$0xff] }
 0x37c   : > { %v5926_v24 = vpack.c.bf16 %v3577_v61, %v3576_v49  ;;  %v3487_v28 = vmax.f32 %v3401_v53, 0.0  ;;  %v5751_v32 = vpop.f32.mrb[106].mxu1  ;;  %5925 = vmatprep.subr.bf16.mxu1 %v6090_v33  ;;  %v5948_v61 = vpack.c.bf16 %v4142_v59, %v4141_v55  ;;  %v4868_v59 = vld [vmem:[%s7560_s12] ss:$0 sm:$0xff] }
 0x37d   : > { %v3579_v48 = vmul.f32 %v7088_v38, %v3488_v0  ;;  %v3416_v4 = vadd.f32 %v5751_v32, %v7095_v21  ;;  %v3410_v20 = vpop.f32.mrb[107].mxu1 }
 0x37e   : > { %v3578_v36 = vmul.f32 %v7135_v57, %v3487_v28  ;;  %v3411_v56 = vadd.f32 %v7095_v21, %v3410_v20  ;;  %3742 = vmatmul.mubr.f32.gmra.mrb[126].mxu1 %v3614_v16  ;;  %5949 = vmatprep.subr.bf16.mxu0 %v5948_v61 }
 0x37f   : > { %v3490_v60 = vmax.f32 %v3416_v4, 0.0  ;;  %5927 = vmatpush1.bf16.msra.mxu1 %v5926_v24  ;;  %4843 = vmatprep.mubr.msk.f32.mxu1 %vm676_vm0, %v3589_v44 }
 0x380   : > { %v5929_v14 = vpack.c.bf16 %v3579_v48, %v3578_v36  ;;  %v3489_v18 = vmax.f32 %v3411_v56, 0.0  ;;  %v5754_v26 = vpop.f32.mrb[108].mxu1  ;;  %5928 = vmatprep.subr.bf16.mxu1 %v6090_v33  ;;  %5951 = vmatpush3.bf16.msra.mxu0 %v5948_v61 }
 0x381   : > { %v3581_v30 = vmul.f32 %v7090_v42, %v3490_v60  ;;  %v3426_v38 = vadd.f32 %v5754_v26, %v7095_v21  ;;  %v3420_v40 = vpop.f32.mrb[109].mxu1 }
 0x382   : > { %v3580_v52 = vmul.f32 %v7099_v62, %v3489_v18  ;;  %v3421_v10 = vadd.f32 %v7095_v21, %v3420_v40 }
 0x383   : > { %v3492_v46 = vmax.f32 %v3426_v38, 0.0  ;;  %5930 = vmatpush1.bf16.msra.mxu1 %v5929_v14 }
 0x384   : > { %v5932_v50 = vpack.c.bf16 %v3581_v30, %v3580_v52  ;;  %v3491_v58 = vmax.f32 %v3421_v10, 0.0  ;;  %v5757_v2 = vpop.f32.mrb[110].mxu1  ;;  %5931 = vmatprep.subr.bf16.mxu1 %v6090_v33 }
 0x385   : > { %v3583_v1 = vmul.f32 %v7114_v27, %v3492_v46  ;;  %v3436_v3 = vadd.f32 %v5757_v2, %v7095_v21  ;;  %v3430_v22 = vpop.f32.mrb[111].mxu1  ;;  %v3592_v27 = vld [vmem:[%s7552_s4 + $0x30] sm:$0xff] }
 0x386   : > { %v3582_v42 = vmul.f32 %v7101_v6, %v3491_v58  ;;  %v3431_v34 = vadd.f32 %v7095_v21, %v3430_v22  ;;  %v3588_v6 = vld [vmem:[%s7552_s4 + $0x10] sm:$0xff]  ;;  %v3593_v21 = vld [vmem:[%s7552_s4 + $0x38] sm:$0xff] }
 0x387   : > { %v3494_v54 = vmax.f32 %v3436_v3, 0.0  ;;  %5933 = vmatpush1.bf16.msra.mxu1 %v5932_v50 }
 0x388   : > { %v5935_v62 = vpack.c.bf16 %v3583_v1, %v3582_v42  ;;  %v3493_v11 = vmax.f32 %v3431_v34, 0.0  ;;  %5934 = vmatprep.subr.bf16.mxu1 %v6090_v33 }
 0x389   : > { %v3585_v13 = vmul.f32 %v7135_v57, %v3494_v54  ;;  %v3596_v57 = vld [vmem:[%s7552_s4 + $0x50] sm:$0xff] }
 0x38a   : > { %v3584_v7 = vmul.f32 %v7123_v35, %v3493_v11  ;;  %v3597_v35 = vld [vmem:[%s7552_s4 + $0x58] sm:$0xff] }
 0x38b   : > { %5936 = vmatpush1.bf16.msra.mxu1 %v5935_v62 }
 0x38c   : > { %v5938_v9 = vpack.c.bf16 %v3585_v13, %v3584_v7  ;;  %5937 = vmatprep.subr.bf16.mxu1 %v6090_v33  ;;  %v3601_v33 = vld [vmem:[%s7552_s4 + $0x78] sm:$0xff] }
 0x38f   : > { %5939 = vmatpush1.bf16.msra.mxu1 %v5938_v9 }
 0x390   : > { %5941 = vmatprep.subr.bf16.mxu1 %v5940_v47 }
 0x392   : > { %3812 = vmatmul.mubr.f32.vlgmr.msra.gmra.mrb[128].mxu1 %v3588_v6 }
 0x393   : > { %4844 = vmatprep.mubr.msk.f32.mxu1 %vm676_vm0, %v3593_v21  ;;  %5943 = vmatpush3.bf16.msra.mxu1 %v5940_v47  ;;  %v4143_v47 = vld [vmem:[%s7561_s13 + $0x10] sm:$0xff] }
 0x394   : > { %5945 = vmatprep.subr.bf16.mxu1 %v5944_v43  ;;  %v5952_v31 = vpack.c.bf16 %v4144_v29, %v4143_v47 }
 0x396   : > { %3817 = vmatmul.mubr.f32.gmra.mrb[130].mxu1 %v3592_v27  ;;  %5953 = vmatprep.subr.bf16.mxu0 %v5952_v31 }
 0x397   : > { %4845 = vmatprep.mubr.msk.f32.mxu1 %vm676_vm0, %v3597_v35  ;;  %5947 = vmatpush3.bf16.msra.mxu1 %v5944_v43  ;;  %v4289_v43 = vld [vmem:[%s7563_s15] sm:$0xff] }
 0x398   : > { %5778 = vmatprep.subr.msk.mxu1 %vm1930_vm1, %v3852_v51  ;;  %5955 = vmatpush3.bf16.msra.mxu0 %v5952_v31 }
 0x39a   : > { %3822 = vmatmul.mubr.f32.gmra.mrb[132].mxu1 %v3596_v57 }
 0x39b   : > { %4846 = vmatprep.mubr.msk.f32.mxu1 %vm676_vm0, %v3601_v33 }
 0x39e   : > { %3827 = vmatmul.mubr.f32.gmra.mrb[134].mxu1 %v3600_v19 }
 0x39f   : > { %4847 = vmatprep.mubr.msk.f32.mxu1 %vm676_vm0, %v3605_v17 }
 0x3a2   : > { %3832 = vmatmul.mubr.f32.gmra.mrb[136].mxu1 %v3604_v63 }
 0x3a3   : > { %4848 = vmatprep.mubr.msk.f32.mxu1 %vm676_vm0, %v3609_v5  ;;  %v7436_v5 = vld [vmem:[%s6211_s1] sm:$0xff] }
 0x3a6   : > { %3837 = vmatmul.mubr.f32.gmra.mrb[138].mxu1 %v3608_v15  ;;  %v7441_v15 = vld [vmem:[%s6211_s1 + $0x8] sm:$0xff] }
 0x3a7   : > { %4849 = vmatprep.mubr.msk.f32.mxu1 %vm676_vm0, %v3613_v23  ;;  %v7446_v23 = vld [vmem:[%s6211_s1 + $0x10] sm:$0xff] }
 0x3aa   : > { %3842 = vmatmul.mubr.f32.gmra.mrb[140].mxu1 %v3612_v37  ;;  %v7451_v37 = vld [vmem:[%s6211_s1 + $0x18] sm:$0xff] }
 0x3ab   : > { %4850 = vmatprep.mubr.msk.f32.mxu1 %vm676_vm0, %v3617_v41  ;;  %v7456_v41 = vld [vmem:[%s6211_s1 + $0x20] sm:$0xff] }
 0x3ae   : > { %3847 = vmatmul.mubr.f32.gmra.mrb[142].mxu1 %v3616_v45  ;;  %v7461_v45 = vld [vmem:[%s6211_s1 + $0x28] sm:$0xff] }
 0x435   : > { %v5225_v8 = vpop.f32.mrb[112].mxu1 }
 0x436   : > { %v5226_v12 = vpop.f32.mrb[113].mxu1 }
 0x437   : > { %v5227_v49 = vadd.f32 %v5226_v12, %v5225_v8 }
 0x439   : > { %v5228_v53 = vpop.f32.mrb[114].mxu1 }
 0x43a   : > { %v5229_v0 = vpop.f32.mrb[115].mxu1 }
 0x43b   : > { %v5230_v16 = vadd.f32 %v5229_v0, %v5228_v53 }
 0x43d   : > { %v5231_v24 = vpop.f32.mrb[116].mxu1 }
 0x43e   : > { %v5232_v28 = vpop.f32.mrb[117].mxu1 }
 0x43f   : > { %v5233_v32 = vadd.f32 %v5232_v28, %v5231_v24 }
 0x441   : > { %v5234_v44 = vpop.f32.mrb[118].mxu1 }
 0x442   : > { %v5235_v48 = vpop.f32.mrb[119].mxu1 }
 0x443   : > { %v5236_v4 = vadd.f32 %v5235_v48, %v5234_v44 }
 0x445   : > { %v5237_v20 = vpop.f32.mrb[120].mxu1 }
 0x446   : > { %v5238_v36 = vpop.f32.mrb[121].mxu1 }
 0x447   : > { %v5239_v56 = vadd.f32 %v5238_v36, %v5237_v20 }
 0x449   : > { %v5240_v60 = vpop.f32.mrb[122].mxu1 }
 0x44a   : > { %v5241_v14 = vpop.f32.mrb[123].mxu1 }
 0x44b   : > { %v5242_v18 = vadd.f32 %v5241_v14, %v5240_v60 }
 0x44d   : > { %v5243_v26 = vpop.f32.mrb[124].mxu1 }
 0x44e   : > { %v5244_v30 = vpop.f32.mrb[125].mxu1 }
 0x44f   : > { %v5245_v38 = vadd.f32 %v5244_v30, %v5243_v26 }
 0x451   : > { %v5246_v40 = vpop.f32.mrb[126].mxu1 }
 0x452   : > { %v5247_v52 = vpop.f32.mrb[127].mxu1 }
 0x453   : > { %v5248_v10 = vadd.f32 %v5247_v52, %v5246_v40 }
 0x465   : > { %v3813_v46 = vpop.f32.mrb[128].mxu1 }
 0x466   : > { %v3814_v50 = vadd.f32 %v5227_v49, %v3813_v46  ;;  %v3815_v58 = vpop.f32.mrb[129].mxu1  ;;  %v4292_v46 = vld [vmem:[%s7563_s15 + $0x18] sm:$0xff] }
 0x467   : > { %v4869_v58 = vld [vmem:[%s7562_s14] ss:$0 sm:$0xff] }
 0x468   : > { %5766 = vmatprep.mubr.msk.f32.mxu1 %vm2925_vm3, %v3814_v50 }
 0x469   : > { %v3818_v2 = vpop.f32.mrb[130].mxu1 }
 0x46a   : > { %v3819_v1 = vadd.f32 %v5230_v16, %v3818_v2  ;;  %v3820_v3 = vpop.f32.mrb[131].mxu1 }
 0x46c   : > { %5767 = vmatmul.mubr.msk.f32.vlgmr.msra.gmra.mrb[144].mxu1 %vm2925_vm3, %v3819_v1 }
 0x46d   : > { %v3823_v22 = vpop.f32.mrb[132].mxu1  ;;  %5779 = vmatpush3.msk.msra.mxu1 %vm1930_vm1, %v3852_v51  ;;  %v4290_v51 = vld [vmem:[%s7563_s15 + $0x8] sm:$0xff] }
 0x46e   : > { %v3824_v42 = vadd.f32 %v5233_v32, %v3823_v22  ;;  %v3825_v34 = vpop.f32.mrb[133].mxu1  ;;  %v5956_v55 = vpack.c.bf16 %v4290_v51, %v4289_v43  ;;  %v4878_v43 = vld [vmem:[%s7564_s16] ss:$0 sm:$0xff] }
 0x470   : > { %5769 = vmatprep.mubr.msk.f32.mxu1 %vm2925_vm3, %v3824_v42  ;;  %5957 = vmatprep.subr.bf16.mxu1 %v5956_v55 }
 0x471   : > { %v3828_v54 = vpop.f32.mrb[134].mxu1 }
 0x472   : > { %v3829_v62 = vadd.f32 %v5236_v4, %v3828_v54  ;;  %v3830_v11 = vpop.f32.mrb[135].mxu1 }
 0x474   : > { %5770 = vmatmul.mubr.msk.f32.gmra.mrb[146].mxu1 %vm2925_vm3, %v3829_v62 }
 0x475   : > { %v3833_v13 = vpop.f32.mrb[136].mxu1 }
 0x476   : > { %v3834_v7 = vadd.f32 %v5239_v56, %v3833_v13  ;;  %v3835_v9 = vpop.f32.mrb[137].mxu1 }
 0x478   : > { %5772 = vmatprep.mubr.msk.f32.mxu1 %vm2925_vm3, %v3834_v7 }
 0x479   : > { %v3838_v6 = vpop.f32.mrb[138].mxu1 }
 0x47a   : > { %v3839_v21 = vadd.f32 %v5242_v18, %v3838_v6  ;;  %v3840_v27 = vpop.f32.mrb[139].mxu1 }
 0x47c   : > { %5773 = vmatmul.mubr.msk.f32.gmra.mrb[148].mxu1 %vm2925_vm3, %v3839_v21 }
 0x47d   : > { %v3843_v35 = vpop.f32.mrb[140].mxu1 }
 0x47e   : > { %v3844_v57 = vadd.f32 %v5245_v38, %v3843_v35  ;;  %v3845_v33 = vpop.f32.mrb[141].mxu1 }
 0x480   : > { %5775 = vmatprep.mubr.msk.f32.mxu1 %vm2925_vm3, %v3844_v57 }
 0x481   : > { %v3848_v19 = vpop.f32.mrb[142].mxu1 }
 0x482   : > { %v3849_v17 = vadd.f32 %v5248_v10, %v3848_v19  ;;  %v3850_v63 = vpop.f32.mrb[143].mxu1  ;;  %v4291_v10 = vld [vmem:[%s7563_s15 + $0x10] sm:$0xff] }
 0x483   : > { %v5960_v50 = vpack.c.bf16 %v4292_v46, %v4291_v10 }
 0x484   : > { %5776 = vmatmul.mubr.msk.f32.gmra.mrb[150].mxu1 %vm2925_vm3, %v3849_v17 }
 0x485   : > { %5780 = vmatprep.mubr.msk.f32.mxu1 %vm1761_vm2, %v7436_v5 }
 0x488   : > { %5781 = vmatmul.mubr.msk.f32.vlgmr.msra.gmra.mrb[144].mxu1 %vm1761_vm2, %v7441_v15 }
 0x489   : > { %5783 = vmatprep.mubr.msk.f32.mxu1 %vm1761_vm2, %v7446_v23  ;;  %5959 = vmatpush3.bf16.msra.mxu1 %v5956_v55 }
 0x48a   : > { %5961 = vmatprep.subr.bf16.mxu1 %v5960_v50 }
 0x48c   : > { %5784 = vmatmul.mubr.msk.f32.gmra.mrb[146].mxu1 %vm1761_vm2, %v7451_v37 }
 0x48d   : > { %5786 = vmatprep.mubr.msk.f32.mxu1 %vm1761_vm2, %v7456_v41  ;;  %5963 = vmatpush3.bf16.msra.mxu1 %v5960_v50 }
 0x490   : > { %5787 = vmatmul.mubr.msk.f32.gmra.mrb[148].mxu1 %vm1761_vm2, %v7461_v45 }
 0x491   : > { %5789 = vmatprep.mubr.msk.f32.mxu1 %vm1761_vm2, %v7466_v25 }
 0x494   : > { %5790 = vmatmul.mubr.msk.f32.gmra.mrb[150].mxu1 %vm1761_vm2, %v7471_v39 }
 0x55b   : > { %v5782_v61 = vpop.f32.mrb[144].mxu1 }
 0x55c   : > { %v4126_v8 = vadd.f32 %v5782_v61, %v4868_v59  ;;  %v4079_v12 = vpop.f32.mrb[145].mxu1 }
 0x55d   : > { %v4125_v49 = vadd.f32 %v4868_v59, %v4079_v12 }
 0x55e   : > { %v4134_v16 = vmax.f32 %v4126_v8, 0.0 }
 0x55f   : > { %v4133_v53 = vmax.f32 %v4125_v49, 0.0  ;;  %v5785_v0 = vpop.f32.mrb[146].mxu1 }
 0x560   : > { %v4128_v24 = vadd.f32 %v5785_v0, %v4868_v59  ;;  %v4089_v28 = vpop.f32.mrb[147].mxu1 }
 0x561   : > { %5800 = vmatprep.mubr.msk.f32.mxu0 %vm2925_vm3, %v4133_v53  ;;  %v4127_v32 = vadd.f32 %v4868_v59, %v4089_v28 }
 0x562   : > { %5801 = vmatmul.mubr.msk.f32.vlgmr.msra.gmra.mrb[112].mxu0 %vm2925_vm3, %v4134_v16  ;;  %v4136_v4 = vmax.f32 %v4128_v24, 0.0 }
 0x563   : > { %v4135_v44 = vmax.f32 %v4127_v32, 0.0  ;;  %v5788_v48 = vpop.f32.mrb[148].mxu1 }
 0x564   : > { %v4130_v20 = vadd.f32 %v5788_v48, %v4868_v59  ;;  %v4099_v36 = vpop.f32.mrb[149].mxu1 }
 0x565   : > { %5803 = vmatprep.mubr.msk.f32.mxu0 %vm2925_vm3, %v4135_v44  ;;  %v4129_v56 = vadd.f32 %v4868_v59, %v4099_v36 }
 0x566   : > { %5804 = vmatmul.mubr.msk.f32.gmra.mrb[114].mxu0 %vm2925_vm3, %v4136_v4  ;;  %v4138_v18 = vmax.f32 %v4130_v20, 0.0 }
 0x567   : > { %v4137_v60 = vmax.f32 %v4129_v56, 0.0  ;;  %v5791_v14 = vpop.f32.mrb[150].mxu1 }
 0x568   : > { %v4132_v26 = vadd.f32 %v5791_v14, %v4868_v59  ;;  %v4109_v30 = vpop.f32.mrb[151].mxu1 }
 0x569   : > { %5806 = vmatprep.mubr.msk.f32.mxu0 %vm2925_vm3, %v4137_v60  ;;  %v4131_v38 = vadd.f32 %v4868_v59, %v4109_v30 }
 0x56a   : > { %5807 = vmatmul.mubr.msk.f32.gmra.mrb[116].mxu0 %vm2925_vm3, %v4138_v18  ;;  %v4140_v52 = vmax.f32 %v4132_v26, 0.0 }
 0x56b   : > { %v4139_v40 = vmax.f32 %v4131_v38, 0.0 }
 0x56d   : > { %5809 = vmatprep.mubr.msk.f32.mxu0 %vm2925_vm3, %v4139_v40 }
 0x56e   : > { %5810 = vmatmul.mubr.msk.f32.gmra.mrb[118].mxu0 %vm2925_vm3, %v4140_v52 }
 0x635   : > { %v5802_v2 = vpop.f32.mrb[112].mxu0 }
 0x636   : > { %v4248_v1 = vadd.f32 %v5802_v2, %v4869_v58  ;;  %v4242_v3 = vpop.f32.mrb[113].mxu0 }
 0x637   : > { %v4243_v22 = vadd.f32 %v4869_v58, %v4242_v3 }
 0x638   : > { %v4282_v54 = vmax.f32 %v4248_v1, 0.0 }
 0x639   : > { %v4281_v42 = vmax.f32 %v4243_v22, 0.0  ;;  %v5805_v34 = vpop.f32.mrb[114].mxu0 }
 0x63a   : > { %v4258_v62 = vadd.f32 %v5805_v34, %v4869_v58  ;;  %v4252_v11 = vpop.f32.mrb[115].mxu0 }
 0x63b   : > { %5820 = vmatprep.mubr.msk.f32.mxu1 %vm2925_vm3, %v4281_v42  ;;  %v4253_v13 = vadd.f32 %v4869_v58, %v4252_v11 }
 0x63c   : > { %5821 = vmatmul.mubr.msk.f32.vlgmr.msra.gmra.mrb[152].mxu1 %vm2925_vm3, %v4282_v54  ;;  %v4284_v6 = vmax.f32 %v4258_v62, 0.0 }
 0x63d   : > { %v4283_v7 = vmax.f32 %v4253_v13, 0.0  ;;  %v5808_v9 = vpop.f32.mrb[116].mxu0 }
 0x63e   : > { %v4268_v21 = vadd.f32 %v5808_v9, %v4869_v58  ;;  %v4262_v27 = vpop.f32.mrb[117].mxu0 }
 0x63f   : > { %5823 = vmatprep.mubr.msk.f32.mxu1 %vm2925_vm3, %v4283_v7  ;;  %v4263_v35 = vadd.f32 %v4869_v58, %v4262_v27 }
 0x640   : > { %5824 = vmatmul.mubr.msk.f32.gmra.mrb[154].mxu1 %vm2925_vm3, %v4284_v6  ;;  %v4286_v19 = vmax.f32 %v4268_v21, 0.0 }
 0x641   : > { %v4285_v57 = vmax.f32 %v4263_v35, 0.0  ;;  %v5811_v33 = vpop.f32.mrb[118].mxu0 }
 0x642   : > { %v4278_v17 = vadd.f32 %v5811_v33, %v4869_v58  ;;  %v4272_v63 = vpop.f32.mrb[119].mxu0 }
 0x643   : > { %5826 = vmatprep.mubr.msk.f32.mxu1 %vm2925_vm3, %v4285_v57  ;;  %v4273_v47 = vadd.f32 %v4869_v58, %v4272_v63 }
 0x644   : > { %5827 = vmatmul.mubr.msk.f32.gmra.mrb[156].mxu1 %vm2925_vm3, %v4286_v19  ;;  %v4288_v31 = vmax.f32 %v4278_v17, 0.0 }
 0x645   : > { %v4287_v29 = vmax.f32 %v4273_v47, 0.0 }
 0x647   : > { %5829 = vmatprep.mubr.msk.f32.mxu1 %vm2925_vm3, %v4287_v29 }
 0x648   : > { %5830 = vmatmul.mubr.msk.f32.gmra.mrb[158].mxu1 %vm2925_vm3, %v4288_v31 }
 0x70f   : > { %v5822_v51 = vpop.f32.mrb[152].mxu1 }
 0x710   : > { %v4396_v55 = vadd.f32 %v5822_v51, %v4878_v43  ;;  %v4390_v59 = vpop.f32.mrb[153].mxu1 }
 0x711   : > { %v4391_v61 = vadd.f32 %v4878_v43, %v4390_v59 }
 0x712   : > { %v4430_v8 = vadd.f32 %v7441_v15, %v4396_v55 }
 0x713   : > { %v4429_v12 = vadd.f32 %v7436_v5, %v4391_v61  ;;  %v5825_v49 = vpop.f32.mrb[154].mxu1 }
 0x714   : > { %4438 = vst.msk [vmem:[%s604_s20 + $0x8] sm:$0xff] %vm1761_vm2, %v4430_v8  ;;  %v4406_v53 = vadd.f32 %v5825_v49, %v4878_v43  ;;  %v4400_v0 = vpop.f32.mrb[155].mxu1 }
 0x715   : > { %4437 = vst.msk [vmem:[%s604_s20] sm:$0xff] %vm1761_vm2, %v4429_v12  ;;  %v4401_v16 = vadd.f32 %v4878_v43, %v4400_v0 }
 0x716   : > { %v4432_v24 = vadd.f32 %v7451_v37, %v4406_v53 }
 0x717   : > { %v4431_v28 = vadd.f32 %v7446_v23, %v4401_v16  ;;  %v5828_v32 = vpop.f32.mrb[156].mxu1 }
 0x718   : > { %4440 = vst.msk [vmem:[%s604_s20 + $0x18] sm:$0xff] %vm1761_vm2, %v4432_v24  ;;  %v4416_v44 = vadd.f32 %v5828_v32, %v4878_v43  ;;  %v4410_v48 = vpop.f32.mrb[157].mxu1 }
 0x719   : > { %4439 = vst.msk [vmem:[%s604_s20 + $0x10] sm:$0xff] %vm1761_vm2, %v4431_v28  ;;  %v4411_v5 = vadd.f32 %v4878_v43, %v4410_v48 }
 0x71a   : > { %v4434_v15 = vadd.f32 %v7461_v45, %v4416_v44 }
 0x71b   : > { %v4433_v4 = vadd.f32 %v7456_v41, %v4411_v5  ;;  %v5831_v20 = vpop.f32.mrb[158].mxu1 }
 0x71c   : > { %4442 = vst.msk [vmem:[%s604_s20 + $0x28] sm:$0xff] %vm1761_vm2, %v4434_v15  ;;  %v4426_v36 = vadd.f32 %v5831_v20, %v4878_v43  ;;  %v4420_v56 = vpop.f32.mrb[159].mxu1 }
 0x71d   : > { %4441 = vst.msk [vmem:[%s604_s20 + $0x20] sm:$0xff] %vm1761_vm2, %v4433_v4  ;;  %v4421_v23 = vadd.f32 %v4878_v43, %v4420_v56 }
 0x71e   : > { %v4436_v37 = vadd.f32 %v7471_v39, %v4426_v36 }
 0x71f   : > { %v4435_v60 = vadd.f32 %v7466_v25, %v4421_v23 }
 0x720   : > { %4444 = vst.msk [vmem:[%s604_s20 + $0x38] sm:$0xff] %vm1761_vm2, %v4436_v37 }
 0x721   : > { %4443 = vst.msk [vmem:[%s604_s20 + $0x30] sm:$0xff] %vm1761_vm2, %v4435_v60 }
 0x722 PF: > { %s27_s26 = sadd.s32 1, %s6087_s26   ;;  %s7572_s24 = smov %s6083_s25 }
 0x723   : > { %p24_p5 = scmp.ge.s32.totalorder %s27_s26, 4   ;;  %s7573_s25 = smov %s7575_s27 }
 0x725   :  { %26 = sbr.rel (!%p24_p5) target bundleno = 3 (0x3), region = 121 }

</bundles_post_ra>
